<compile_context>
chip_gen: v7x
topology: tpu7x:2x2x1
jax: 0.10.0
libtpu: 0.0.40
codegen_flags: <defaults>
</compile_context>

<pallas_src>
import functools

import jax
import jax.numpy as jnp
from jax import lax
from jax.experimental import pallas as pl
from jax.experimental.pallas import tpu as pltpu


def _decoder_kernel(x_s, b2_s, pp_ref, b1_ref, w2_ref, rowm_ref, colm_ref,
                    pmask_ref, o_ref, *, G, K0, H1, W1, LANES):
    """Fully fused decoder for one batch element (all planes lane-packed).

    x_s    : SMEM (B*K0,)          latent pixels (scalars), K0 = H0*W0
    b2_s   : SMEM (1,)             convT2 bias
    pp_ref : VMEM (G*K0, H1, 128)  quadrant-response planes (up1+convT1 folded),
                                   lane group q of row (g*K0+k) = channel 4g+q
    b1_ref : VMEM (G, 1, 128)      convT1 bias, lane-broadcast per channel group
    w2_ref : VMEM (G*16, 1, 128)   polyphase convT2 weights, lane-broadcast,
                                   flat idx = ((g*4 + (2*ph+pw))*2 + u)*2 + v
    rowm_ref: VMEM (2, H1, 128)    row edge masks for dr = -1 / +1
    colm_ref: VMEM (2, 1, 128)     lane edge masks for dc = -1 / +1 (per 32-group)
    pmask_ref: VMEM (4, 1, 128)    parity lane-group select masks
    o_ref  : VMEM (1, H1, 128)     packed output (4 parity planes along lanes)
    """
    b = pl.program_id(0)
    f32 = jnp.float32

    # latent scalars for this batch element (SMEM)
    xk = [x_s[b * K0 + k] for k in range(K0)]

    # hoisted edge masks (zero the rows / lanes a +-1 shift would wrap around)
    row_m = [rowm_ref[0], None, rowm_ref[1]]     # index by dr + 1 (dr != 0)
    col_m = [colm_ref[0], None, colm_ref[1]]     # index by dc + 1 (dc != 0)

    shifts = ((-1, 0), (0, 1))   # row/col shifts used by output parity 0 / 1

    # four parity accumulators; lane group q holds the partial sum over
    # channels c == q (mod 4)
    accs = [jnp.zeros((H1, LANES), f32) for _ in range(4)]

    for g in range(G):
        # --- up1 + convT1 + ReLU for 4 lane-packed channels: K0 FMAs over the
        #     precomputed quadrant-response planes (no tap building at all) ---
        y = b1_ref[g]
        for k in range(K0):
            y = y + xk[k] * pp_ref[g * K0 + k]
        y = jnp.maximum(y, 0.0)

        # --- up2 + convT2 in polyphase form: tap shifts via XLU rolls + masks,
        #     each shifted plane consumed immediately (low vreg pressure) -----
        for dc in (-1, 0, 1):
            if dc == 0:
                yc = y
            else:
                yc = pltpu.roll(y, (-dc) % LANES, 1) * col_m[dc + 1]
            for dr in (-1, 0, 1):
                if dr == 0:
                    t = yc
                else:
                    t = pltpu.roll(yc, (-dr) % H1, 0) * row_m[dr + 1]
                for ph in range(2):
                    if dr not in shifts[ph]:
                        continue
                    u = shifts[ph].index(dr)
                    for pw in range(2):
                        if dc not in shifts[pw]:
                            continue
                        v = shifts[pw].index(dc)
                        p = 2 * ph + pw
                        widx = ((g * 4 + p) * 2 + u) * 2 + v
                        accs[p] = accs[p] + t * w2_ref[widx]

    # --- reduce the four 32-lane channel groups (rolls on the idle XLU), add
    #     bias, ReLU, and pack the four parity planes into ONE lane-dense,
    #     full-width (H1, 128) unmasked store -------------------------------
    out = jnp.zeros((H1, LANES), f32)
    for p in range(4):
        red = accs[p] + pltpu.roll(accs[p], 2 * W1, 1)
        red = red + pltpu.roll(red, W1, 1)
        out = out + pmask_ref[p] * red
    o_ref[0, :, :] = jnp.maximum(out + b2_s[0], 0.0)


def decoder_forward_pallas(x, params):
    x = jnp.asarray(x, jnp.float32)
    B, Cin, H0, W0 = x.shape
    assert Cin == 1
    SH, SW = 8, 16                      # up1 scale factors (h, w)
    H1, W1 = H0 * SH, W0 * SW           # after up1 / convT1   (16, 32)
    H2, W2 = 2 * H1, 2 * W1             # after up2 / convT2   (32, 64)
    C1 = params["w1"].shape[1]          # 16
    assert C1 % 4 == 0
    G = C1 // 4                         # channel groups (4 channels per vreg)
    K0 = H0 * W0                        # latent scalars per batch element
    LANES = 4 * W1                      # 128 lanes (4 groups of W1)
    f32 = jnp.float32

    # convT(stride=1,k=3,p=1) == correlation with spatially flipped kernel
    g1 = jnp.asarray(params["w1"], f32)[0, :, ::-1, ::-1]          # (C1,3,3)
    b1 = jnp.asarray(params["b1"], f32)
    g2 = jnp.asarray(params["w2"], f32)[:, 0, ::-1, ::-1]          # (C1,3,3)
    b2 = jnp.asarray(params["b2"], f32)

    # ---- fold up1 (8x16 nearest) + convT1 into K0 quadrant-response planes:
    #      y_c = relu(b1[c] + sum_k x[b,k] * P[c,k]), P batch-independent ----
    qr = jnp.arange(K0) // W0
    qc = jnp.arange(K0) % W0
    Q = ((jnp.arange(H1)[:, None] // SH == qr[:, None, None]) &
         (jnp.arange(W1)[None, :] // SW == qc[:, None, None])).astype(f32)
    Qpad = jnp.pad(Q, ((0, 0), (1, 1), (1, 1)))
    Qs = jnp.stack([jnp.stack([Qpad[:, a:a + H1, bb:bb + W1]
                               for bb in range(3)], 0)
                    for a in range(3)], 0)                         # (3,3,K0,H1,W1)
    P = jnp.einsum('abkij,cab->ckij', Qs, g1)                      # (C1,K0,H1,W1)
    Pp = (P.reshape(G, 4, K0, H1, W1)
            .transpose(0, 2, 3, 1, 4)
            .reshape(G * K0, H1, LANES))                           # lane-packed

    b1b = jnp.repeat(b1.reshape(G, 4), W1, axis=1).reshape(G, 1, LANES)

    # ---- convT2: flip + fold 2x nearest upsample into per-parity 2x2 kernels
    #      (polyphase), then lane-broadcast per channel group -----------------
    sel = jnp.array([[[1, 0, 0], [0, 1, 1]],
                     [[1, 1, 0], [0, 0, 1]]], f32)                 # (parity, idx, tap)
    w2c = jnp.einsum('pua,qvb,cab->pqcuv', sel, sel, g2)           # (2,2,C1,2,2)
    w2g = w2c.transpose(2, 0, 1, 3, 4).reshape(G, 4, 2, 2, 2, 2)   # [g,q,ph,pw,u,v]
    w2g = w2g.transpose(0, 2, 3, 4, 5, 1)                          # [g,ph,pw,u,v,q]
    w2b = jnp.repeat(w2g, W1, axis=-1).reshape(G * 16, 1, LANES)

    # ---- batch-independent edge / parity masks (VMEM constants) ------------
    rows = jnp.arange(H1)
    rowm = jnp.stack([(rows > 0), (rows < H1 - 1)], 0).astype(f32)   # dr=-1, dr=+1
    rowm = jnp.broadcast_to(rowm[:, :, None], (2, H1, LANES))
    lane_in_g = jnp.arange(LANES) % W1
    colm = jnp.stack([(lane_in_g > 0), (lane_in_g < W1 - 1)],
                     0).astype(f32).reshape(2, 1, LANES)             # dc=-1, dc=+1
    pmask = (jnp.arange(LANES)[None, :] // W1 ==
             jnp.arange(4)[:, None]).astype(f32).reshape(4, 1, LANES)

    kernel = functools.partial(_decoder_kernel, G=G, K0=K0, H1=H1, W1=W1,
                               LANES=LANES)

    packed = pl.pallas_call(
        kernel,
        out_shape=jax.ShapeDtypeStruct((B, H1, LANES), jnp.float32),
        grid=(B,),
        in_specs=[
            pl.BlockSpec(memory_space=pltpu.MemorySpace.SMEM),        # x (flat)
            pl.BlockSpec(memory_space=pltpu.MemorySpace.SMEM),        # b2
            pl.BlockSpec((G * K0, H1, LANES), lambda b: (0, 0, 0)),   # Pp
            pl.BlockSpec((G, 1, LANES), lambda b: (0, 0, 0)),         # b1b
            pl.BlockSpec((G * 16, 1, LANES), lambda b: (0, 0, 0)),    # w2b
            pl.BlockSpec((2, H1, LANES), lambda b: (0, 0, 0)),        # rowm
            pl.BlockSpec((2, 1, LANES), lambda b: (0, 0, 0)),         # colm
            pl.BlockSpec((4, 1, LANES), lambda b: (0, 0, 0)),         # pmask
        ],
        out_specs=pl.BlockSpec((1, H1, LANES), lambda b: (b, 0, 0)),
        compiler_params=pltpu.CompilerParams(
            dimension_semantics=("parallel",)),
    )(x.reshape(B * K0), b2, Pp, b1b, w2b, rowm, colm, pmask)

    # Unpack the 4 parity planes -> NCHW (layout plumbing on a tiny array):
    # packed[b, i, W1*(2*ph+pw) + j] == out[b, 0, 2*i+ph, 2*j+pw]
    out = packed.reshape(B, H1, 2, 2, W1).transpose(0, 1, 2, 4, 3)
    return out.reshape(B, 1, H2, W2)


decoder_forward = jax.jit(decoder_forward_pallas)


def init_decoder_params(key):
    k1, k2, k3, k4 = jax.random.split(key, 4)
    # Shapes follow nn.ConvTranspose2d(in, out, 3): weight (in, out, 3, 3), bias (out,)
    bound1 = 1.0 / (16 * 9) ** 0.5
    bound2 = 1.0 / (1 * 9) ** 0.5
    return {
        "w1": jax.random.uniform(k1, (1, 16, 3, 3), jnp.float32, -bound1, bound1),
        "b1": jax.random.uniform(k2, (16,), jnp.float32, -bound1, bound1),
        "w2": jax.random.uniform(k3, (16, 1, 3, 3), jnp.float32, -bound2, bound2),
        "b2": jax.random.uniform(k4, (1,), jnp.float32, -bound2, bound2),
    }


def _reference_decoder(x, params):
    # Pure-JAX (XLA) reference of the PyTorch module, for self-checking.
    def up(t, sh, sw):
        return jnp.repeat(jnp.repeat(t, sh, axis=2), sw, axis=3)

    def convT(t, w, b):
        # ConvTranspose2d(stride=1, k=3, p=1) == correlation with spatially
        # flipped kernel, padding 1, in/out channel roles swapped.
        wf = jnp.transpose(w[:, :, ::-1, ::-1], (1, 0, 2, 3))   # (Cout,Cin,3,3)
        y = lax.conv_general_dilated(t, wf, window_strides=(1, 1),
                                     padding=((1, 1), (1, 1)),
                                     dimension_numbers=("NCHW", "OIHW", "NCHW"))
        return y + b[None, :, None, None]

    t = up(jnp.asarray(x, jnp.float32), 8, 16)
    t = jax.nn.relu(convT(t, params["w1"], params["b1"]))
    t = up(t, 2, 2)
    t = jax.nn.relu(convT(t, params["w2"], params["b2"]))
    return t


if __name__ == "__main__":
    key = jax.random.PRNGKey(0)
    kx, kp = jax.random.split(key)

    # Latent input (NCHW): (batch=2, channels=1, 2, 2)
    x = jax.random.normal(kx, (2, 1, 2, 2), jnp.float32)
    params = init_decoder_params(kp)

    out = decoder_forward(x, params)
    out = jax.block_until_ready(out)

    expected_shape = (2, 1, 32, 64)   # (2,1,2,2) -> x(8,16) -> conv -> x2 -> conv
    assert out.shape == expected_shape, (out.shape, expected_shape)
    assert out.dtype == jnp.float32
    assert bool(jnp.all(out >= 0.0))  # ReLU output

    ref = _reference_decoder(x, params)
    max_err = float(jnp.max(jnp.abs(out - ref)))
    assert bool(jnp.allclose(out, ref, atol=1e-4, rtol=1e-4)), max_err

    print("KERNEL_OK")
</pallas_src>

<mosaic_0001>
module attributes {stable_mosaic.version = 11 : i64} {
  func.func @_decoder_kernel(%arg0: i32, %arg1: memref<8xf32, #tpu.memory_space<smem>>, %arg2: memref<1xf32, #tpu.memory_space<smem>>, %arg3: memref<16x16x128xf32, #tpu.memory_space<vmem>>, %arg4: memref<4x1x128xf32, #tpu.memory_space<vmem>>, %arg5: memref<64x1x128xf32, #tpu.memory_space<vmem>>, %arg6: memref<2x16x128xf32, #tpu.memory_space<vmem>>, %arg7: memref<2x1x128xf32, #tpu.memory_space<vmem>>, %arg8: memref<4x1x128xf32, #tpu.memory_space<vmem>>, %arg9: memref<1x16x128xf32, #tpu.memory_space<vmem>>) attributes {dimension_semantics = [#tpu.dimension_semantics<parallel>], iteration_bounds = array<i64: 2>, scalar_prefetch = 0 : i64, scratch_operands = 0 : i64, tpu.core_type = #tpu.core_type<tc>, window_params = [{transform_indices = @transform_0, window_bounds = array<i64: 8>}, {transform_indices = @transform_1, window_bounds = array<i64: 1>}, {pipeline_mode = #tpu.pipeline_mode<synchronous>, transform_indices = @transform_2, window_bounds = array<i64: 16, 16, 128>}, {pipeline_mode = #tpu.pipeline_mode<synchronous>, transform_indices = @transform_3, window_bounds = array<i64: 4, 1, 128>}, {pipeline_mode = #tpu.pipeline_mode<synchronous>, transform_indices = @transform_4, window_bounds = array<i64: 64, 1, 128>}, {pipeline_mode = #tpu.pipeline_mode<synchronous>, transform_indices = @transform_5, window_bounds = array<i64: 2, 16, 128>}, {pipeline_mode = #tpu.pipeline_mode<synchronous>, transform_indices = @transform_6, window_bounds = array<i64: 2, 1, 128>}, {pipeline_mode = #tpu.pipeline_mode<synchronous>, transform_indices = @transform_7, window_bounds = array<i64: 4, 1, 128>}, {transform_indices = @transform_8, window_bounds = array<i64: 1, 16, 128>}]} {
    %c4_i32 = arith.constant 4 : i32
    %0 = arith.muli %arg0, %c4_i32 : i32
    %c0_i32 = arith.constant 0 : i32
    %1 = arith.addi %0, %c0_i32 : i32
    %2 = arith.index_cast %1 : i32 to index
    %3 = memref.load %arg1[%2] : memref<8xf32, #tpu.memory_space<smem>>
    %c4_i32_0 = arith.constant 4 : i32
    %4 = arith.muli %arg0, %c4_i32_0 : i32
    %c1_i32 = arith.constant 1 : i32
    %5 = arith.addi %4, %c1_i32 : i32
    %6 = arith.index_cast %5 : i32 to index
    %7 = memref.load %arg1[%6] : memref<8xf32, #tpu.memory_space<smem>>
    %c4_i32_1 = arith.constant 4 : i32
    %8 = arith.muli %arg0, %c4_i32_1 : i32
    %c2_i32 = arith.constant 2 : i32
    %9 = arith.addi %8, %c2_i32 : i32
    %10 = arith.index_cast %9 : i32 to index
    %11 = memref.load %arg1[%10] : memref<8xf32, #tpu.memory_space<smem>>
    %c4_i32_2 = arith.constant 4 : i32
    %12 = arith.muli %arg0, %c4_i32_2 : i32
    %c3_i32 = arith.constant 3 : i32
    %13 = arith.addi %12, %c3_i32 : i32
    %14 = arith.index_cast %13 : i32 to index
    %15 = memref.load %arg1[%14] : memref<8xf32, #tpu.memory_space<smem>>
    %c0 = arith.constant 0 : index
    %c0_3 = arith.constant 0 : index
    %c0_4 = arith.constant 0 : index
    %16 = vector.load %arg6[%c0, %c0_3, %c0_4] : memref<2x16x128xf32, #tpu.memory_space<vmem>>, vector<1x16x128xf32>
    %17 = vector.shape_cast %16 : vector<1x16x128xf32> to vector<16x128xf32>
    %c1 = arith.constant 1 : index
    %c0_5 = arith.constant 0 : index
    %c0_6 = arith.constant 0 : index
    %18 = vector.load %arg6[%c1, %c0_5, %c0_6] : memref<2x16x128xf32, #tpu.memory_space<vmem>>, vector<1x16x128xf32>
    %19 = vector.shape_cast %18 : vector<1x16x128xf32> to vector<16x128xf32>
    %c0_7 = arith.constant 0 : index
    %c0_8 = arith.constant 0 : index
    %c0_9 = arith.constant 0 : index
    %20 = vector.load %arg7[%c0_7, %c0_8, %c0_9] : memref<2x1x128xf32, #tpu.memory_space<vmem>>, vector<1x1x128xf32>
    %21 = vector.shape_cast %20 : vector<1x1x128xf32> to vector<1x128xf32>
    %c1_10 = arith.constant 1 : index
    %c0_11 = arith.constant 0 : index
    %c0_12 = arith.constant 0 : index
    %22 = vector.load %arg7[%c1_10, %c0_11, %c0_12] : memref<2x1x128xf32, #tpu.memory_space<vmem>>, vector<1x1x128xf32>
    %23 = vector.shape_cast %22 : vector<1x1x128xf32> to vector<1x128xf32>
    %cst = arith.constant 0.000000e+00 : f32
    %24 = vector.broadcast %cst : f32 to vector<16x128xf32>
    %cst_13 = arith.constant 0.000000e+00 : f32
    %25 = vector.broadcast %cst_13 : f32 to vector<16x128xf32>
    %cst_14 = arith.constant 0.000000e+00 : f32
    %26 = vector.broadcast %cst_14 : f32 to vector<16x128xf32>
    %cst_15 = arith.constant 0.000000e+00 : f32
    %27 = vector.broadcast %cst_15 : f32 to vector<16x128xf32>
    %c0_16 = arith.constant 0 : index
    %c0_17 = arith.constant 0 : index
    %c0_18 = arith.constant 0 : index
    %28 = vector.load %arg4[%c0_16, %c0_17, %c0_18] : memref<4x1x128xf32, #tpu.memory_space<vmem>>, vector<1x1x128xf32>
    %29 = vector.shape_cast %28 : vector<1x1x128xf32> to vector<1x128xf32>
    %c0_19 = arith.constant 0 : index
    %c0_20 = arith.constant 0 : index
    %c0_21 = arith.constant 0 : index
    %30 = vector.load %arg3[%c0_19, %c0_20, %c0_21] : memref<16x16x128xf32, #tpu.memory_space<vmem>>, vector<1x16x128xf32>
    %31 = vector.shape_cast %30 : vector<1x16x128xf32> to vector<16x128xf32>
    %32 = vector.broadcast %3 : f32 to vector<16x128xf32>
    %33 = arith.mulf %32, %31 : vector<16x128xf32>
    %34 = vector.broadcast %29 : vector<1x128xf32> to vector<16x128xf32>
    %35 = arith.addf %34, %33 : vector<16x128xf32>
    %c1_22 = arith.constant 1 : index
    %c0_23 = arith.constant 0 : index
    %c0_24 = arith.constant 0 : index
    %36 = vector.load %arg3[%c1_22, %c0_23, %c0_24] : memref<16x16x128xf32, #tpu.memory_space<vmem>>, vector<1x16x128xf32>
    %37 = vector.shape_cast %36 : vector<1x16x128xf32> to vector<16x128xf32>
    %38 = vector.broadcast %7 : f32 to vector<16x128xf32>
    %39 = arith.mulf %38, %37 : vector<16x128xf32>
    %40 = arith.addf %35, %39 : vector<16x128xf32>
    %c2 = arith.constant 2 : index
    %c0_25 = arith.constant 0 : index
    %c0_26 = arith.constant 0 : index
    %41 = vector.load %arg3[%c2, %c0_25, %c0_26] : memref<16x16x128xf32, #tpu.memory_space<vmem>>, vector<1x16x128xf32>
    %42 = vector.shape_cast %41 : vector<1x16x128xf32> to vector<16x128xf32>
    %43 = vector.broadcast %11 : f32 to vector<16x128xf32>
    %44 = arith.mulf %43, %42 : vector<16x128xf32>
    %45 = arith.addf %40, %44 : vector<16x128xf32>
    %c3 = arith.constant 3 : index
    %c0_27 = arith.constant 0 : index
    %c0_28 = arith.constant 0 : index
    %46 = vector.load %arg3[%c3, %c0_27, %c0_28] : memref<16x16x128xf32, #tpu.memory_space<vmem>>, vector<1x16x128xf32>
    %47 = vector.shape_cast %46 : vector<1x16x128xf32> to vector<16x128xf32>
    %48 = vector.broadcast %15 : f32 to vector<16x128xf32>
    %49 = arith.mulf %48, %47 : vector<16x128xf32>
    %50 = arith.addf %45, %49 : vector<16x128xf32>
    %cst_29 = arith.constant 0.000000e+00 : f32
    %51 = vector.broadcast %cst_29 : f32 to vector<16x128xf32>
    %52 = arith.maximumf %50, %51 : vector<16x128xf32>
    %c1_i32_30 = arith.constant 1 : i32
    %53 = tpu.dynamic_rotate %52 by %c1_i32_30 dim 1 : vector<16x128xf32>, i32 -> vector<16x128xf32>
    %54 = vector.broadcast %21 : vector<1x128xf32> to vector<16x128xf32>
    %55 = arith.mulf %53, %54 : vector<16x128xf32>
    %c1_i32_31 = arith.constant 1 : i32
    %56 = tpu.dynamic_rotate %55 by %c1_i32_31 dim 0 : vector<16x128xf32>, i32 -> vector<16x128xf32>
    %57 = arith.mulf %56, %17 : vector<16x128xf32>
    %c0_32 = arith.constant 0 : index
    %c0_33 = arith.constant 0 : index
    %c0_34 = arith.constant 0 : index
    %58 = vector.load %arg5[%c0_32, %c0_33, %c0_34] : memref<64x1x128xf32, #tpu.memory_space<vmem>>, vector<1x1x128xf32>
    %59 = vector.shape_cast %58 : vector<1x1x128xf32> to vector<1x128xf32>
    %60 = vector.broadcast %59 : vector<1x128xf32> to vector<16x128xf32>
    %61 = arith.mulf %57, %60 : vector<16x128xf32>
    %62 = arith.addf %24, %61 : vector<16x128xf32>
    %c2_35 = arith.constant 2 : index
    %c0_36 = arith.constant 0 : index
    %c0_37 = arith.constant 0 : index
    %63 = vector.load %arg5[%c2_35, %c0_36, %c0_37] : memref<64x1x128xf32, #tpu.memory_space<vmem>>, vector<1x1x128xf32>
    %64 = vector.shape_cast %63 : vector<1x1x128xf32> to vector<1x128xf32>
    %65 = vector.broadcast %64 : vector<1x128xf32> to vector<16x128xf32>
    %66 = arith.mulf %55, %65 : vector<16x128xf32>
    %67 = arith.addf %62, %66 : vector<16x128xf32>
    %c8 = arith.constant 8 : index
    %c0_38 = arith.constant 0 : index
    %c0_39 = arith.constant 0 : index
    %68 = vector.load %arg5[%c8, %c0_38, %c0_39] : memref<64x1x128xf32, #tpu.memory_space<vmem>>, vector<1x1x128xf32>
    %69 = vector.shape_cast %68 : vector<1x1x128xf32> to vector<1x128xf32>
    %70 = vector.broadcast %69 : vector<1x128xf32> to vector<16x128xf32>
    %71 = arith.mulf %55, %70 : vector<16x128xf32>
    %72 = arith.addf %26, %71 : vector<16x128xf32>
    %c15_i32 = arith.constant 15 : i32
    %73 = tpu.dynamic_rotate %55 by %c15_i32 dim 0 : vector<16x128xf32>, i32 -> vector<16x128xf32>
    %74 = arith.mulf %73, %19 : vector<16x128xf32>
    %c10 = arith.constant 10 : index
    %c0_40 = arith.constant 0 : index
    %c0_41 = arith.constant 0 : index
    %75 = vector.load %arg5[%c10, %c0_40, %c0_41] : memref<64x1x128xf32, #tpu.memory_space<vmem>>, vector<1x1x128xf32>
    %76 = vector.shape_cast %75 : vector<1x1x128xf32> to vector<1x128xf32>
    %77 = vector.broadcast %76 : vector<1x128xf32> to vector<16x128xf32>
    %78 = arith.mulf %74, %77 : vector<16x128xf32>
    %79 = arith.addf %72, %78 : vector<16x128xf32>
    %c1_i32_42 = arith.constant 1 : i32
    %80 = tpu.dynamic_rotate %52 by %c1_i32_42 dim 0 : vector<16x128xf32>, i32 -> vector<16x128xf32>
    %81 = arith.mulf %80, %17 : vector<16x128xf32>
    %c1_43 = arith.constant 1 : index
    %c0_44 = arith.constant 0 : index
    %c0_45 = arith.constant 0 : index
    %82 = vector.load %arg5[%c1_43, %c0_44, %c0_45] : memref<64x1x128xf32, #tpu.memory_space<vmem>>, vector<1x1x128xf32>
    %83 = vector.shape_cast %82 : vector<1x1x128xf32> to vector<1x128xf32>
    %84 = vector.broadcast %83 : vector<1x128xf32> to vector<16x128xf32>
    %85 = arith.mulf %81, %84 : vector<16x128xf32>
    %86 = arith.addf %67, %85 : vector<16x128xf32>
    %c4 = arith.constant 4 : index
    %c0_46 = arith.constant 0 : index
    %c0_47 = arith.constant 0 : index
    %87 = vector.load %arg5[%c4, %c0_46, %c0_47] : memref<64x1x128xf32, #tpu.memory_space<vmem>>, vector<1x1x128xf32>
    %88 = vector.shape_cast %87 : vector<1x1x128xf32> to vector<1x128xf32>
    %89 = vector.broadcast %88 : vector<1x128xf32> to vector<16x128xf32>
    %90 = arith.mulf %81, %89 : vector<16x128xf32>
    %91 = arith.addf %25, %90 : vector<16x128xf32>
    %c3_48 = arith.constant 3 : index
    %c0_49 = arith.constant 0 : index
    %c0_50 = arith.constant 0 : index
    %92 = vector.load %arg5[%c3_48, %c0_49, %c0_50] : memref<64x1x128xf32, #tpu.memory_space<vmem>>, vector<1x1x128xf32>
    %93 = vector.shape_cast %92 : vector<1x1x128xf32> to vector<1x128xf32>
    %94 = vector.broadcast %93 : vector<1x128xf32> to vector<16x128xf32>
    %95 = arith.mulf %52, %94 : vector<16x128xf32>
    %96 = arith.addf %86, %95 : vector<16x128xf32>
    %c6 = arith.constant 6 : index
    %c0_51 = arith.constant 0 : index
    %c0_52 = arith.constant 0 : index
    %97 = vector.load %arg5[%c6, %c0_51, %c0_52] : memref<64x1x128xf32, #tpu.memory_space<vmem>>, vector<1x1x128xf32>
    %98 = vector.shape_cast %97 : vector<1x1x128xf32> to vector<1x128xf32>
    %99 = vector.broadcast %98 : vector<1x128xf32> to vector<16x128xf32>
    %100 = arith.mulf %52, %99 : vector<16x128xf32>
    %101 = arith.addf %91, %100 : vector<16x128xf32>
    %c9 = arith.constant 9 : index
    %c0_53 = arith.constant 0 : index
    %c0_54 = arith.constant 0 : index
    %102 = vector.load %arg5[%c9, %c0_53, %c0_54] : memref<64x1x128xf32, #tpu.memory_space<vmem>>, vector<1x1x128xf32>
    %103 = vector.shape_cast %102 : vector<1x1x128xf32> to vector<1x128xf32>
    %104 = vector.broadcast %103 : vector<1x128xf32> to vector<16x128xf32>
    %105 = arith.mulf %52, %104 : vector<16x128xf32>
    %106 = arith.addf %79, %105 : vector<16x128xf32>
    %c12 = arith.constant 12 : index
    %c0_55 = arith.constant 0 : index
    %c0_56 = arith.constant 0 : index
    %107 = vector.load %arg5[%c12, %c0_55, %c0_56] : memref<64x1x128xf32, #tpu.memory_space<vmem>>, vector<1x1x128xf32>
    %108 = vector.shape_cast %107 : vector<1x1x128xf32> to vector<1x128xf32>
    %109 = vector.broadcast %108 : vector<1x128xf32> to vector<16x128xf32>
    %110 = arith.mulf %52, %109 : vector<16x128xf32>
    %111 = arith.addf %27, %110 : vector<16x128xf32>
    %c15_i32_57 = arith.constant 15 : i32
    %112 = tpu.dynamic_rotate %52 by %c15_i32_57 dim 0 : vector<16x128xf32>, i32 -> vector<16x128xf32>
    %113 = arith.mulf %112, %19 : vector<16x128xf32>
    %c11 = arith.constant 11 : index
    %c0_58 = arith.constant 0 : index
    %c0_59 = arith.constant 0 : index
    %114 = vector.load %arg5[%c11, %c0_58, %c0_59] : memref<64x1x128xf32, #tpu.memory_space<vmem>>, vector<1x1x128xf32>
    %115 = vector.shape_cast %114 : vector<1x1x128xf32> to vector<1x128xf32>
    %116 = vector.broadcast %115 : vector<1x128xf32> to vector<16x128xf32>
    %117 = arith.mulf %113, %116 : vector<16x128xf32>
    %118 = arith.addf %106, %117 : vector<16x128xf32>
    %c14 = arith.constant 14 : index
    %c0_60 = arith.constant 0 : index
    %c0_61 = arith.constant 0 : index
    %119 = vector.load %arg5[%c14, %c0_60, %c0_61] : memref<64x1x128xf32, #tpu.memory_space<vmem>>, vector<1x1x128xf32>
    %120 = vector.shape_cast %119 : vector<1x1x128xf32> to vector<1x128xf32>
    %121 = vector.broadcast %120 : vector<1x128xf32> to vector<16x128xf32>
    %122 = arith.mulf %113, %121 : vector<16x128xf32>
    %123 = arith.addf %111, %122 : vector<16x128xf32>
    %c127_i32 = arith.constant 127 : i32
    %124 = tpu.dynamic_rotate %52 by %c127_i32 dim 1 : vector<16x128xf32>, i32 -> vector<16x128xf32>
    %125 = vector.broadcast %23 : vector<1x128xf32> to vector<16x128xf32>
    %126 = arith.mulf %124, %125 : vector<16x128xf32>
    %c1_i32_62 = arith.constant 1 : i32
    %127 = tpu.dynamic_rotate %126 by %c1_i32_62 dim 0 : vector<16x128xf32>, i32 -> vector<16x128xf32>
    %128 = arith.mulf %127, %17 : vector<16x128xf32>
    %c5 = arith.constant 5 : index
    %c0_63 = arith.constant 0 : index
    %c0_64 = arith.constant 0 : index
    %129 = vector.load %arg5[%c5, %c0_63, %c0_64] : memref<64x1x128xf32, #tpu.memory_space<vmem>>, vector<1x1x128xf32>
    %130 = vector.shape_cast %129 : vector<1x1x128xf32> to vector<1x128xf32>
    %131 = vector.broadcast %130 : vector<1x128xf32> to vector<16x128xf32>
    %132 = arith.mulf %128, %131 : vector<16x128xf32>
    %133 = arith.addf %101, %132 : vector<16x128xf32>
    %c7 = arith.constant 7 : index
    %c0_65 = arith.constant 0 : index
    %c0_66 = arith.constant 0 : index
    %134 = vector.load %arg5[%c7, %c0_65, %c0_66] : memref<64x1x128xf32, #tpu.memory_space<vmem>>, vector<1x1x128xf32>
    %135 = vector.shape_cast %134 : vector<1x1x128xf32> to vector<1x128xf32>
    %136 = vector.broadcast %135 : vector<1x128xf32> to vector<16x128xf32>
    %137 = arith.mulf %126, %136 : vector<16x128xf32>
    %138 = arith.addf %133, %137 : vector<16x128xf32>
    %c13 = arith.constant 13 : index
    %c0_67 = arith.constant 0 : index
    %c0_68 = arith.constant 0 : index
    %139 = vector.load %arg5[%c13, %c0_67, %c0_68] : memref<64x1x128xf32, #tpu.memory_space<vmem>>, vector<1x1x128xf32>
    %140 = vector.shape_cast %139 : vector<1x1x128xf32> to vector<1x128xf32>
    %141 = vector.broadcast %140 : vector<1x128xf32> to vector<16x128xf32>
    %142 = arith.mulf %126, %141 : vector<16x128xf32>
    %143 = arith.addf %123, %142 : vector<16x128xf32>
    %c15_i32_69 = arith.constant 15 : i32
    %144 = tpu.dynamic_rotate %126 by %c15_i32_69 dim 0 : vector<16x128xf32>, i32 -> vector<16x128xf32>
    %145 = arith.mulf %144, %19 : vector<16x128xf32>
    %c15 = arith.constant 15 : index
    %c0_70 = arith.constant 0 : index
    %c0_71 = arith.constant 0 : index
    %146 = vector.load %arg5[%c15, %c0_70, %c0_71] : memref<64x1x128xf32, #tpu.memory_space<vmem>>, vector<1x1x128xf32>
    %147 = vector.shape_cast %146 : vector<1x1x128xf32> to vector<1x128xf32>
    %148 = vector.broadcast %147 : vector<1x128xf32> to vector<16x128xf32>
    %149 = arith.mulf %145, %148 : vector<16x128xf32>
    %150 = arith.addf %143, %149 : vector<16x128xf32>
    %c1_72 = arith.constant 1 : index
    %c0_73 = arith.constant 0 : index
    %c0_74 = arith.constant 0 : index
    %151 = vector.load %arg4[%c1_72, %c0_73, %c0_74] : memref<4x1x128xf32, #tpu.memory_space<vmem>>, vector<1x1x128xf32>
    %152 = vector.shape_cast %151 : vector<1x1x128xf32> to vector<1x128xf32>
    %c4_75 = arith.constant 4 : index
    %c0_76 = arith.constant 0 : index
    %c0_77 = arith.constant 0 : index
    %153 = vector.load %arg3[%c4_75, %c0_76, %c0_77] : memref<16x16x128xf32, #tpu.memory_space<vmem>>, vector<1x16x128xf32>
    %154 = vector.shape_cast %153 : vector<1x16x128xf32> to vector<16x128xf32>
    %155 = vector.broadcast %3 : f32 to vector<16x128xf32>
    %156 = arith.mulf %155, %154 : vector<16x128xf32>
    %157 = vector.broadcast %152 : vector<1x128xf32> to vector<16x128xf32>
    %158 = arith.addf %157, %156 : vector<16x128xf32>
    %c5_78 = arith.constant 5 : index
    %c0_79 = arith.constant 0 : index
    %c0_80 = arith.constant 0 : index
    %159 = vector.load %arg3[%c5_78, %c0_79, %c0_80] : memref<16x16x128xf32, #tpu.memory_space<vmem>>, vector<1x16x128xf32>
    %160 = vector.shape_cast %159 : vector<1x16x128xf32> to vector<16x128xf32>
    %161 = vector.broadcast %7 : f32 to vector<16x128xf32>
    %162 = arith.mulf %161, %160 : vector<16x128xf32>
    %163 = arith.addf %158, %162 : vector<16x128xf32>
    %c6_81 = arith.constant 6 : index
    %c0_82 = arith.constant 0 : index
    %c0_83 = arith.constant 0 : index
    %164 = vector.load %arg3[%c6_81, %c0_82, %c0_83] : memref<16x16x128xf32, #tpu.memory_space<vmem>>, vector<1x16x128xf32>
    %165 = vector.shape_cast %164 : vector<1x16x128xf32> to vector<16x128xf32>
    %166 = vector.broadcast %11 : f32 to vector<16x128xf32>
    %167 = arith.mulf %166, %165 : vector<16x128xf32>
    %168 = arith.addf %163, %167 : vector<16x128xf32>
    %c7_84 = arith.constant 7 : index
    %c0_85 = arith.constant 0 : index
    %c0_86 = arith.constant 0 : index
    %169 = vector.load %arg3[%c7_84, %c0_85, %c0_86] : memref<16x16x128xf32, #tpu.memory_space<vmem>>, vector<1x16x128xf32>
    %170 = vector.shape_cast %169 : vector<1x16x128xf32> to vector<16x128xf32>
    %171 = vector.broadcast %15 : f32 to vector<16x128xf32>
    %172 = arith.mulf %171, %170 : vector<16x128xf32>
    %173 = arith.addf %168, %172 : vector<16x128xf32>
    %cst_87 = arith.constant 0.000000e+00 : f32
    %174 = vector.broadcast %cst_87 : f32 to vector<16x128xf32>
    %175 = arith.maximumf %173, %174 : vector<16x128xf32>
    %c1_i32_88 = arith.constant 1 : i32
    %176 = tpu.dynamic_rotate %175 by %c1_i32_88 dim 1 : vector<16x128xf32>, i32 -> vector<16x128xf32>
    %177 = vector.broadcast %21 : vector<1x128xf32> to vector<16x128xf32>
    %178 = arith.mulf %176, %177 : vector<16x128xf32>
    %c1_i32_89 = arith.constant 1 : i32
    %179 = tpu.dynamic_rotate %178 by %c1_i32_89 dim 0 : vector<16x128xf32>, i32 -> vector<16x128xf32>
    %180 = arith.mulf %179, %17 : vector<16x128xf32>
    %c16 = arith.constant 16 : index
    %c0_90 = arith.constant 0 : index
    %c0_91 = arith.constant 0 : index
    %181 = vector.load %arg5[%c16, %c0_90, %c0_91] : memref<64x1x128xf32, #tpu.memory_space<vmem>>, vector<1x1x128xf32>
    %182 = vector.shape_cast %181 : vector<1x1x128xf32> to vector<1x128xf32>
    %183 = vector.broadcast %182 : vector<1x128xf32> to vector<16x128xf32>
    %184 = arith.mulf %180, %183 : vector<16x128xf32>
    %185 = arith.addf %96, %184 : vector<16x128xf32>
    %c18 = arith.constant 18 : index
    %c0_92 = arith.constant 0 : index
    %c0_93 = arith.constant 0 : index
    %186 = vector.load %arg5[%c18, %c0_92, %c0_93] : memref<64x1x128xf32, #tpu.memory_space<vmem>>, vector<1x1x128xf32>
    %187 = vector.shape_cast %186 : vector<1x1x128xf32> to vector<1x128xf32>
    %188 = vector.broadcast %187 : vector<1x128xf32> to vector<16x128xf32>
    %189 = arith.mulf %178, %188 : vector<16x128xf32>
    %190 = arith.addf %185, %189 : vector<16x128xf32>
    %c24 = arith.constant 24 : index
    %c0_94 = arith.constant 0 : index
    %c0_95 = arith.constant 0 : index
    %191 = vector.load %arg5[%c24, %c0_94, %c0_95] : memref<64x1x128xf32, #tpu.memory_space<vmem>>, vector<1x1x128xf32>
    %192 = vector.shape_cast %191 : vector<1x1x128xf32> to vector<1x128xf32>
    %193 = vector.broadcast %192 : vector<1x128xf32> to vector<16x128xf32>
    %194 = arith.mulf %178, %193 : vector<16x128xf32>
    %195 = arith.addf %118, %194 : vector<16x128xf32>
    %c15_i32_96 = arith.constant 15 : i32
    %196 = tpu.dynamic_rotate %178 by %c15_i32_96 dim 0 : vector<16x128xf32>, i32 -> vector<16x128xf32>
    %197 = arith.mulf %196, %19 : vector<16x128xf32>
    %c26 = arith.constant 26 : index
    %c0_97 = arith.constant 0 : index
    %c0_98 = arith.constant 0 : index
    %198 = vector.load %arg5[%c26, %c0_97, %c0_98] : memref<64x1x128xf32, #tpu.memory_space<vmem>>, vector<1x1x128xf32>
    %199 = vector.shape_cast %198 : vector<1x1x128xf32> to vector<1x128xf32>
    %200 = vector.broadcast %199 : vector<1x128xf32> to vector<16x128xf32>
    %201 = arith.mulf %197, %200 : vector<16x128xf32>
    %202 = arith.addf %195, %201 : vector<16x128xf32>
    %c1_i32_99 = arith.constant 1 : i32
    %203 = tpu.dynamic_rotate %175 by %c1_i32_99 dim 0 : vector<16x128xf32>, i32 -> vector<16x128xf32>
    %204 = arith.mulf %203, %17 : vector<16x128xf32>
    %c17 = arith.constant 17 : index
    %c0_100 = arith.constant 0 : index
    %c0_101 = arith.constant 0 : index
    %205 = vector.load %arg5[%c17, %c0_100, %c0_101] : memref<64x1x128xf32, #tpu.memory_space<vmem>>, vector<1x1x128xf32>
    %206 = vector.shape_cast %205 : vector<1x1x128xf32> to vector<1x128xf32>
    %207 = vector.broadcast %206 : vector<1x128xf32> to vector<16x128xf32>
    %208 = arith.mulf %204, %207 : vector<16x128xf32>
    %209 = arith.addf %190, %208 : vector<16x128xf32>
    %c20 = arith.constant 20 : index
    %c0_102 = arith.constant 0 : index
    %c0_103 = arith.constant 0 : index
    %210 = vector.load %arg5[%c20, %c0_102, %c0_103] : memref<64x1x128xf32, #tpu.memory_space<vmem>>, vector<1x1x128xf32>
    %211 = vector.shape_cast %210 : vector<1x1x128xf32> to vector<1x128xf32>
    %212 = vector.broadcast %211 : vector<1x128xf32> to vector<16x128xf32>
    %213 = arith.mulf %204, %212 : vector<16x128xf32>
    %214 = arith.addf %138, %213 : vector<16x128xf32>
    %c19 = arith.constant 19 : index
    %c0_104 = arith.constant 0 : index
    %c0_105 = arith.constant 0 : index
    %215 = vector.load %arg5[%c19, %c0_104, %c0_105] : memref<64x1x128xf32, #tpu.memory_space<vmem>>, vector<1x1x128xf32>
    %216 = vector.shape_cast %215 : vector<1x1x128xf32> to vector<1x128xf32>
    %217 = vector.broadcast %216 : vector<1x128xf32> to vector<16x128xf32>
    %218 = arith.mulf %175, %217 : vector<16x128xf32>
    %219 = arith.addf %209, %218 : vector<16x128xf32>
    %c22 = arith.constant 22 : index
    %c0_106 = arith.constant 0 : index
    %c0_107 = arith.constant 0 : index
    %220 = vector.load %arg5[%c22, %c0_106, %c0_107] : memref<64x1x128xf32, #tpu.memory_space<vmem>>, vector<1x1x128xf32>
    %221 = vector.shape_cast %220 : vector<1x1x128xf32> to vector<1x128xf32>
    %222 = vector.broadcast %221 : vector<1x128xf32> to vector<16x128xf32>
    %223 = arith.mulf %175, %222 : vector<16x128xf32>
    %224 = arith.addf %214, %223 : vector<16x128xf32>
    %c25 = arith.constant 25 : index
    %c0_108 = arith.constant 0 : index
    %c0_109 = arith.constant 0 : index
    %225 = vector.load %arg5[%c25, %c0_108, %c0_109] : memref<64x1x128xf32, #tpu.memory_space<vmem>>, vector<1x1x128xf32>
    %226 = vector.shape_cast %225 : vector<1x1x128xf32> to vector<1x128xf32>
    %227 = vector.broadcast %226 : vector<1x128xf32> to vector<16x128xf32>
    %228 = arith.mulf %175, %227 : vector<16x128xf32>
    %229 = arith.addf %202, %228 : vector<16x128xf32>
    %c28 = arith.constant 28 : index
    %c0_110 = arith.constant 0 : index
    %c0_111 = arith.constant 0 : index
    %230 = vector.load %arg5[%c28, %c0_110, %c0_111] : memref<64x1x128xf32, #tpu.memory_space<vmem>>, vector<1x1x128xf32>
    %231 = vector.shape_cast %230 : vector<1x1x128xf32> to vector<1x128xf32>
    %232 = vector.broadcast %231 : vector<1x128xf32> to vector<16x128xf32>
    %233 = arith.mulf %175, %232 : vector<16x128xf32>
    %234 = arith.addf %150, %233 : vector<16x128xf32>
    %c15_i32_112 = arith.constant 15 : i32
    %235 = tpu.dynamic_rotate %175 by %c15_i32_112 dim 0 : vector<16x128xf32>, i32 -> vector<16x128xf32>
    %236 = arith.mulf %235, %19 : vector<16x128xf32>
    %c27 = arith.constant 27 : index
    %c0_113 = arith.constant 0 : index
    %c0_114 = arith.constant 0 : index
    %237 = vector.load %arg5[%c27, %c0_113, %c0_114] : memref<64x1x128xf32, #tpu.memory_space<vmem>>, vector<1x1x128xf32>
    %238 = vector.shape_cast %237 : vector<1x1x128xf32> to vector<1x128xf32>
    %239 = vector.broadcast %238 : vector<1x128xf32> to vector<16x128xf32>
    %240 = arith.mulf %236, %239 : vector<16x128xf32>
    %241 = arith.addf %229, %240 : vector<16x128xf32>
    %c30 = arith.constant 30 : index
    %c0_115 = arith.constant 0 : index
    %c0_116 = arith.constant 0 : index
    %242 = vector.load %arg5[%c30, %c0_115, %c0_116] : memref<64x1x128xf32, #tpu.memory_space<vmem>>, vector<1x1x128xf32>
    %243 = vector.shape_cast %242 : vector<1x1x128xf32> to vector<1x128xf32>
    %244 = vector.broadcast %243 : vector<1x128xf32> to vector<16x128xf32>
    %245 = arith.mulf %236, %244 : vector<16x128xf32>
    %246 = arith.addf %234, %245 : vector<16x128xf32>
    %c127_i32_117 = arith.constant 127 : i32
    %247 = tpu.dynamic_rotate %175 by %c127_i32_117 dim 1 : vector<16x128xf32>, i32 -> vector<16x128xf32>
    %248 = vector.broadcast %23 : vector<1x128xf32> to vector<16x128xf32>
    %249 = arith.mulf %247, %248 : vector<16x128xf32>
    %c1_i32_118 = arith.constant 1 : i32
    %250 = tpu.dynamic_rotate %249 by %c1_i32_118 dim 0 : vector<16x128xf32>, i32 -> vector<16x128xf32>
    %251 = arith.mulf %250, %17 : vector<16x128xf32>
    %c21 = arith.constant 21 : index
    %c0_119 = arith.constant 0 : index
    %c0_120 = arith.constant 0 : index
    %252 = vector.load %arg5[%c21, %c0_119, %c0_120] : memref<64x1x128xf32, #tpu.memory_space<vmem>>, vector<1x1x128xf32>
    %253 = vector.shape_cast %252 : vector<1x1x128xf32> to vector<1x128xf32>
    %254 = vector.broadcast %253 : vector<1x128xf32> to vector<16x128xf32>
    %255 = arith.mulf %251, %254 : vector<16x128xf32>
    %256 = arith.addf %224, %255 : vector<16x128xf32>
    %c23 = arith.constant 23 : index
    %c0_121 = arith.constant 0 : index
    %c0_122 = arith.constant 0 : index
    %257 = vector.load %arg5[%c23, %c0_121, %c0_122] : memref<64x1x128xf32, #tpu.memory_space<vmem>>, vector<1x1x128xf32>
    %258 = vector.shape_cast %257 : vector<1x1x128xf32> to vector<1x128xf32>
    %259 = vector.broadcast %258 : vector<1x128xf32> to vector<16x128xf32>
    %260 = arith.mulf %249, %259 : vector<16x128xf32>
    %261 = arith.addf %256, %260 : vector<16x128xf32>
    %c29 = arith.constant 29 : index
    %c0_123 = arith.constant 0 : index
    %c0_124 = arith.constant 0 : index
    %262 = vector.load %arg5[%c29, %c0_123, %c0_124] : memref<64x1x128xf32, #tpu.memory_space<vmem>>, vector<1x1x128xf32>
    %263 = vector.shape_cast %262 : vector<1x1x128xf32> to vector<1x128xf32>
    %264 = vector.broadcast %263 : vector<1x128xf32> to vector<16x128xf32>
    %265 = arith.mulf %249, %264 : vector<16x128xf32>
    %266 = arith.addf %246, %265 : vector<16x128xf32>
    %c15_i32_125 = arith.constant 15 : i32
    %267 = tpu.dynamic_rotate %249 by %c15_i32_125 dim 0 : vector<16x128xf32>, i32 -> vector<16x128xf32>
    %268 = arith.mulf %267, %19 : vector<16x128xf32>
    %c31 = arith.constant 31 : index
    %c0_126 = arith.constant 0 : index
    %c0_127 = arith.constant 0 : index
    %269 = vector.load %arg5[%c31, %c0_126, %c0_127] : memref<64x1x128xf32, #tpu.memory_space<vmem>>, vector<1x1x128xf32>
    %270 = vector.shape_cast %269 : vector<1x1x128xf32> to vector<1x128xf32>
    %271 = vector.broadcast %270 : vector<1x128xf32> to vector<16x128xf32>
    %272 = arith.mulf %268, %271 : vector<16x128xf32>
    %273 = arith.addf %266, %272 : vector<16x128xf32>
    %c2_128 = arith.constant 2 : index
    %c0_129 = arith.constant 0 : index
    %c0_130 = arith.constant 0 : index
    %274 = vector.load %arg4[%c2_128, %c0_129, %c0_130] : memref<4x1x128xf32, #tpu.memory_space<vmem>>, vector<1x1x128xf32>
    %275 = vector.shape_cast %274 : vector<1x1x128xf32> to vector<1x128xf32>
    %c8_131 = arith.constant 8 : index
    %c0_132 = arith.constant 0 : index
    %c0_133 = arith.constant 0 : index
    %276 = vector.load %arg3[%c8_131, %c0_132, %c0_133] : memref<16x16x128xf32, #tpu.memory_space<vmem>>, vector<1x16x128xf32>
    %277 = vector.shape_cast %276 : vector<1x16x128xf32> to vector<16x128xf32>
    %278 = vector.broadcast %3 : f32 to vector<16x128xf32>
    %279 = arith.mulf %278, %277 : vector<16x128xf32>
    %280 = vector.broadcast %275 : vector<1x128xf32> to vector<16x128xf32>
    %281 = arith.addf %280, %279 : vector<16x128xf32>
    %c9_134 = arith.constant 9 : index
    %c0_135 = arith.constant 0 : index
    %c0_136 = arith.constant 0 : index
    %282 = vector.load %arg3[%c9_134, %c0_135, %c0_136] : memref<16x16x128xf32, #tpu.memory_space<vmem>>, vector<1x16x128xf32>
    %283 = vector.shape_cast %282 : vector<1x16x128xf32> to vector<16x128xf32>
    %284 = vector.broadcast %7 : f32 to vector<16x128xf32>
    %285 = arith.mulf %284, %283 : vector<16x128xf32>
    %286 = arith.addf %281, %285 : vector<16x128xf32>
    %c10_137 = arith.constant 10 : index
    %c0_138 = arith.constant 0 : index
    %c0_139 = arith.constant 0 : index
    %287 = vector.load %arg3[%c10_137, %c0_138, %c0_139] : memref<16x16x128xf32, #tpu.memory_space<vmem>>, vector<1x16x128xf32>
    %288 = vector.shape_cast %287 : vector<1x16x128xf32> to vector<16x128xf32>
    %289 = vector.broadcast %11 : f32 to vector<16x128xf32>
    %290 = arith.mulf %289, %288 : vector<16x128xf32>
    %291 = arith.addf %286, %290 : vector<16x128xf32>
    %c11_140 = arith.constant 11 : index
    %c0_141 = arith.constant 0 : index
    %c0_142 = arith.constant 0 : index
    %292 = vector.load %arg3[%c11_140, %c0_141, %c0_142] : memref<16x16x128xf32, #tpu.memory_space<vmem>>, vector<1x16x128xf32>
    %293 = vector.shape_cast %292 : vector<1x16x128xf32> to vector<16x128xf32>
    %294 = vector.broadcast %15 : f32 to vector<16x128xf32>
    %295 = arith.mulf %294, %293 : vector<16x128xf32>
    %296 = arith.addf %291, %295 : vector<16x128xf32>
    %cst_143 = arith.constant 0.000000e+00 : f32
    %297 = vector.broadcast %cst_143 : f32 to vector<16x128xf32>
    %298 = arith.maximumf %296, %297 : vector<16x128xf32>
    %c1_i32_144 = arith.constant 1 : i32
    %299 = tpu.dynamic_rotate %298 by %c1_i32_144 dim 1 : vector<16x128xf32>, i32 -> vector<16x128xf32>
    %300 = vector.broadcast %21 : vector<1x128xf32> to vector<16x128xf32>
    %301 = arith.mulf %299, %300 : vector<16x128xf32>
    %c1_i32_145 = arith.constant 1 : i32
    %302 = tpu.dynamic_rotate %301 by %c1_i32_145 dim 0 : vector<16x128xf32>, i32 -> vector<16x128xf32>
    %303 = arith.mulf %302, %17 : vector<16x128xf32>
    %c32 = arith.constant 32 : index
    %c0_146 = arith.constant 0 : index
    %c0_147 = arith.constant 0 : index
    %304 = vector.load %arg5[%c32, %c0_146, %c0_147] : memref<64x1x128xf32, #tpu.memory_space<vmem>>, vector<1x1x128xf32>
    %305 = vector.shape_cast %304 : vector<1x1x128xf32> to vector<1x128xf32>
    %306 = vector.broadcast %305 : vector<1x128xf32> to vector<16x128xf32>
    %307 = arith.mulf %303, %306 : vector<16x128xf32>
    %308 = arith.addf %219, %307 : vector<16x128xf32>
    %c34 = arith.constant 34 : index
    %c0_148 = arith.constant 0 : index
    %c0_149 = arith.constant 0 : index
    %309 = vector.load %arg5[%c34, %c0_148, %c0_149] : memref<64x1x128xf32, #tpu.memory_space<vmem>>, vector<1x1x128xf32>
    %310 = vector.shape_cast %309 : vector<1x1x128xf32> to vector<1x128xf32>
    %311 = vector.broadcast %310 : vector<1x128xf32> to vector<16x128xf32>
    %312 = arith.mulf %301, %311 : vector<16x128xf32>
    %313 = arith.addf %308, %312 : vector<16x128xf32>
    %c40 = arith.constant 40 : index
    %c0_150 = arith.constant 0 : index
    %c0_151 = arith.constant 0 : index
    %314 = vector.load %arg5[%c40, %c0_150, %c0_151] : memref<64x1x128xf32, #tpu.memory_space<vmem>>, vector<1x1x128xf32>
    %315 = vector.shape_cast %314 : vector<1x1x128xf32> to vector<1x128xf32>
    %316 = vector.broadcast %315 : vector<1x128xf32> to vector<16x128xf32>
    %317 = arith.mulf %301, %316 : vector<16x128xf32>
    %318 = arith.addf %241, %317 : vector<16x128xf32>
    %c15_i32_152 = arith.constant 15 : i32
    %319 = tpu.dynamic_rotate %301 by %c15_i32_152 dim 0 : vector<16x128xf32>, i32 -> vector<16x128xf32>
    %320 = arith.mulf %319, %19 : vector<16x128xf32>
    %c42 = arith.constant 42 : index
    %c0_153 = arith.constant 0 : index
    %c0_154 = arith.constant 0 : index
    %321 = vector.load %arg5[%c42, %c0_153, %c0_154] : memref<64x1x128xf32, #tpu.memory_space<vmem>>, vector<1x1x128xf32>
    %322 = vector.shape_cast %321 : vector<1x1x128xf32> to vector<1x128xf32>
    %323 = vector.broadcast %322 : vector<1x128xf32> to vector<16x128xf32>
    %324 = arith.mulf %320, %323 : vector<16x128xf32>
    %325 = arith.addf %318, %324 : vector<16x128xf32>
    %c1_i32_155 = arith.constant 1 : i32
    %326 = tpu.dynamic_rotate %298 by %c1_i32_155 dim 0 : vector<16x128xf32>, i32 -> vector<16x128xf32>
    %327 = arith.mulf %326, %17 : vector<16x128xf32>
    %c33 = arith.constant 33 : index
    %c0_156 = arith.constant 0 : index
    %c0_157 = arith.constant 0 : index
    %328 = vector.load %arg5[%c33, %c0_156, %c0_157] : memref<64x1x128xf32, #tpu.memory_space<vmem>>, vector<1x1x128xf32>
    %329 = vector.shape_cast %328 : vector<1x1x128xf32> to vector<1x128xf32>
    %330 = vector.broadcast %329 : vector<1x128xf32> to vector<16x128xf32>
    %331 = arith.mulf %327, %330 : vector<16x128xf32>
    %332 = arith.addf %313, %331 : vector<16x128xf32>
    %c36 = arith.constant 36 : index
    %c0_158 = arith.constant 0 : index
    %c0_159 = arith.constant 0 : index
    %333 = vector.load %arg5[%c36, %c0_158, %c0_159] : memref<64x1x128xf32, #tpu.memory_space<vmem>>, vector<1x1x128xf32>
    %334 = vector.shape_cast %333 : vector<1x1x128xf32> to vector<1x128xf32>
    %335 = vector.broadcast %334 : vector<1x128xf32> to vector<16x128xf32>
    %336 = arith.mulf %327, %335 : vector<16x128xf32>
    %337 = arith.addf %261, %336 : vector<16x128xf32>
    %c35 = arith.constant 35 : index
    %c0_160 = arith.constant 0 : index
    %c0_161 = arith.constant 0 : index
    %338 = vector.load %arg5[%c35, %c0_160, %c0_161] : memref<64x1x128xf32, #tpu.memory_space<vmem>>, vector<1x1x128xf32>
    %339 = vector.shape_cast %338 : vector<1x1x128xf32> to vector<1x128xf32>
    %340 = vector.broadcast %339 : vector<1x128xf32> to vector<16x128xf32>
    %341 = arith.mulf %298, %340 : vector<16x128xf32>
    %342 = arith.addf %332, %341 : vector<16x128xf32>
    %c38 = arith.constant 38 : index
    %c0_162 = arith.constant 0 : index
    %c0_163 = arith.constant 0 : index
    %343 = vector.load %arg5[%c38, %c0_162, %c0_163] : memref<64x1x128xf32, #tpu.memory_space<vmem>>, vector<1x1x128xf32>
    %344 = vector.shape_cast %343 : vector<1x1x128xf32> to vector<1x128xf32>
    %345 = vector.broadcast %344 : vector<1x128xf32> to vector<16x128xf32>
    %346 = arith.mulf %298, %345 : vector<16x128xf32>
    %347 = arith.addf %337, %346 : vector<16x128xf32>
    %c41 = arith.constant 41 : index
    %c0_164 = arith.constant 0 : index
    %c0_165 = arith.constant 0 : index
    %348 = vector.load %arg5[%c41, %c0_164, %c0_165] : memref<64x1x128xf32, #tpu.memory_space<vmem>>, vector<1x1x128xf32>
    %349 = vector.shape_cast %348 : vector<1x1x128xf32> to vector<1x128xf32>
    %350 = vector.broadcast %349 : vector<1x128xf32> to vector<16x128xf32>
    %351 = arith.mulf %298, %350 : vector<16x128xf32>
    %352 = arith.addf %325, %351 : vector<16x128xf32>
    %c44 = arith.constant 44 : index
    %c0_166 = arith.constant 0 : index
    %c0_167 = arith.constant 0 : index
    %353 = vector.load %arg5[%c44, %c0_166, %c0_167] : memref<64x1x128xf32, #tpu.memory_space<vmem>>, vector<1x1x128xf32>
    %354 = vector.shape_cast %353 : vector<1x1x128xf32> to vector<1x128xf32>
    %355 = vector.broadcast %354 : vector<1x128xf32> to vector<16x128xf32>
    %356 = arith.mulf %298, %355 : vector<16x128xf32>
    %357 = arith.addf %273, %356 : vector<16x128xf32>
    %c15_i32_168 = arith.constant 15 : i32
    %358 = tpu.dynamic_rotate %298 by %c15_i32_168 dim 0 : vector<16x128xf32>, i32 -> vector<16x128xf32>
    %359 = arith.mulf %358, %19 : vector<16x128xf32>
    %c43 = arith.constant 43 : index
    %c0_169 = arith.constant 0 : index
    %c0_170 = arith.constant 0 : index
    %360 = vector.load %arg5[%c43, %c0_169, %c0_170] : memref<64x1x128xf32, #tpu.memory_space<vmem>>, vector<1x1x128xf32>
    %361 = vector.shape_cast %360 : vector<1x1x128xf32> to vector<1x128xf32>
    %362 = vector.broadcast %361 : vector<1x128xf32> to vector<16x128xf32>
    %363 = arith.mulf %359, %362 : vector<16x128xf32>
    %364 = arith.addf %352, %363 : vector<16x128xf32>
    %c46 = arith.constant 46 : index
    %c0_171 = arith.constant 0 : index
    %c0_172 = arith.constant 0 : index
    %365 = vector.load %arg5[%c46, %c0_171, %c0_172] : memref<64x1x128xf32, #tpu.memory_space<vmem>>, vector<1x1x128xf32>
    %366 = vector.shape_cast %365 : vector<1x1x128xf32> to vector<1x128xf32>
    %367 = vector.broadcast %366 : vector<1x128xf32> to vector<16x128xf32>
    %368 = arith.mulf %359, %367 : vector<16x128xf32>
    %369 = arith.addf %357, %368 : vector<16x128xf32>
    %c127_i32_173 = arith.constant 127 : i32
    %370 = tpu.dynamic_rotate %298 by %c127_i32_173 dim 1 : vector<16x128xf32>, i32 -> vector<16x128xf32>
    %371 = vector.broadcast %23 : vector<1x128xf32> to vector<16x128xf32>
    %372 = arith.mulf %370, %371 : vector<16x128xf32>
    %c1_i32_174 = arith.constant 1 : i32
    %373 = tpu.dynamic_rotate %372 by %c1_i32_174 dim 0 : vector<16x128xf32>, i32 -> vector<16x128xf32>
    %374 = arith.mulf %373, %17 : vector<16x128xf32>
    %c37 = arith.constant 37 : index
    %c0_175 = arith.constant 0 : index
    %c0_176 = arith.constant 0 : index
    %375 = vector.load %arg5[%c37, %c0_175, %c0_176] : memref<64x1x128xf32, #tpu.memory_space<vmem>>, vector<1x1x128xf32>
    %376 = vector.shape_cast %375 : vector<1x1x128xf32> to vector<1x128xf32>
    %377 = vector.broadcast %376 : vector<1x128xf32> to vector<16x128xf32>
    %378 = arith.mulf %374, %377 : vector<16x128xf32>
    %379 = arith.addf %347, %378 : vector<16x128xf32>
    %c39 = arith.constant 39 : index
    %c0_177 = arith.constant 0 : index
    %c0_178 = arith.constant 0 : index
    %380 = vector.load %arg5[%c39, %c0_177, %c0_178] : memref<64x1x128xf32, #tpu.memory_space<vmem>>, vector<1x1x128xf32>
    %381 = vector.shape_cast %380 : vector<1x1x128xf32> to vector<1x128xf32>
    %382 = vector.broadcast %381 : vector<1x128xf32> to vector<16x128xf32>
    %383 = arith.mulf %372, %382 : vector<16x128xf32>
    %384 = arith.addf %379, %383 : vector<16x128xf32>
    %c45 = arith.constant 45 : index
    %c0_179 = arith.constant 0 : index
    %c0_180 = arith.constant 0 : index
    %385 = vector.load %arg5[%c45, %c0_179, %c0_180] : memref<64x1x128xf32, #tpu.memory_space<vmem>>, vector<1x1x128xf32>
    %386 = vector.shape_cast %385 : vector<1x1x128xf32> to vector<1x128xf32>
    %387 = vector.broadcast %386 : vector<1x128xf32> to vector<16x128xf32>
    %388 = arith.mulf %372, %387 : vector<16x128xf32>
    %389 = arith.addf %369, %388 : vector<16x128xf32>
    %c15_i32_181 = arith.constant 15 : i32
    %390 = tpu.dynamic_rotate %372 by %c15_i32_181 dim 0 : vector<16x128xf32>, i32 -> vector<16x128xf32>
    %391 = arith.mulf %390, %19 : vector<16x128xf32>
    %c47 = arith.constant 47 : index
    %c0_182 = arith.constant 0 : index
    %c0_183 = arith.constant 0 : index
    %392 = vector.load %arg5[%c47, %c0_182, %c0_183] : memref<64x1x128xf32, #tpu.memory_space<vmem>>, vector<1x1x128xf32>
    %393 = vector.shape_cast %392 : vector<1x1x128xf32> to vector<1x128xf32>
    %394 = vector.broadcast %393 : vector<1x128xf32> to vector<16x128xf32>
    %395 = arith.mulf %391, %394 : vector<16x128xf32>
    %396 = arith.addf %389, %395 : vector<16x128xf32>
    %c3_184 = arith.constant 3 : index
    %c0_185 = arith.constant 0 : index
    %c0_186 = arith.constant 0 : index
    %397 = vector.load %arg4[%c3_184, %c0_185, %c0_186] : memref<4x1x128xf32, #tpu.memory_space<vmem>>, vector<1x1x128xf32>
    %398 = vector.shape_cast %397 : vector<1x1x128xf32> to vector<1x128xf32>
    %c12_187 = arith.constant 12 : index
    %c0_188 = arith.constant 0 : index
    %c0_189 = arith.constant 0 : index
    %399 = vector.load %arg3[%c12_187, %c0_188, %c0_189] : memref<16x16x128xf32, #tpu.memory_space<vmem>>, vector<1x16x128xf32>
    %400 = vector.shape_cast %399 : vector<1x16x128xf32> to vector<16x128xf32>
    %401 = vector.broadcast %3 : f32 to vector<16x128xf32>
    %402 = arith.mulf %401, %400 : vector<16x128xf32>
    %403 = vector.broadcast %398 : vector<1x128xf32> to vector<16x128xf32>
    %404 = arith.addf %403, %402 : vector<16x128xf32>
    %c13_190 = arith.constant 13 : index
    %c0_191 = arith.constant 0 : index
    %c0_192 = arith.constant 0 : index
    %405 = vector.load %arg3[%c13_190, %c0_191, %c0_192] : memref<16x16x128xf32, #tpu.memory_space<vmem>>, vector<1x16x128xf32>
    %406 = vector.shape_cast %405 : vector<1x16x128xf32> to vector<16x128xf32>
    %407 = vector.broadcast %7 : f32 to vector<16x128xf32>
    %408 = arith.mulf %407, %406 : vector<16x128xf32>
    %409 = arith.addf %404, %408 : vector<16x128xf32>
    %c14_193 = arith.constant 14 : index
    %c0_194 = arith.constant 0 : index
    %c0_195 = arith.constant 0 : index
    %410 = vector.load %arg3[%c14_193, %c0_194, %c0_195] : memref<16x16x128xf32, #tpu.memory_space<vmem>>, vector<1x16x128xf32>
    %411 = vector.shape_cast %410 : vector<1x16x128xf32> to vector<16x128xf32>
    %412 = vector.broadcast %11 : f32 to vector<16x128xf32>
    %413 = arith.mulf %412, %411 : vector<16x128xf32>
    %414 = arith.addf %409, %413 : vector<16x128xf32>
    %c15_196 = arith.constant 15 : index
    %c0_197 = arith.constant 0 : index
    %c0_198 = arith.constant 0 : index
    %415 = vector.load %arg3[%c15_196, %c0_197, %c0_198] : memref<16x16x128xf32, #tpu.memory_space<vmem>>, vector<1x16x128xf32>
    %416 = vector.shape_cast %415 : vector<1x16x128xf32> to vector<16x128xf32>
    %417 = vector.broadcast %15 : f32 to vector<16x128xf32>
    %418 = arith.mulf %417, %416 : vector<16x128xf32>
    %419 = arith.addf %414, %418 : vector<16x128xf32>
    %cst_199 = arith.constant 0.000000e+00 : f32
    %420 = vector.broadcast %cst_199 : f32 to vector<16x128xf32>
    %421 = arith.maximumf %419, %420 : vector<16x128xf32>
    %c1_i32_200 = arith.constant 1 : i32
    %422 = tpu.dynamic_rotate %421 by %c1_i32_200 dim 1 : vector<16x128xf32>, i32 -> vector<16x128xf32>
    %423 = vector.broadcast %21 : vector<1x128xf32> to vector<16x128xf32>
    %424 = arith.mulf %422, %423 : vector<16x128xf32>
    %c1_i32_201 = arith.constant 1 : i32
    %425 = tpu.dynamic_rotate %424 by %c1_i32_201 dim 0 : vector<16x128xf32>, i32 -> vector<16x128xf32>
    %426 = arith.mulf %425, %17 : vector<16x128xf32>
    %c48 = arith.constant 48 : index
    %c0_202 = arith.constant 0 : index
    %c0_203 = arith.constant 0 : index
    %427 = vector.load %arg5[%c48, %c0_202, %c0_203] : memref<64x1x128xf32, #tpu.memory_space<vmem>>, vector<1x1x128xf32>
    %428 = vector.shape_cast %427 : vector<1x1x128xf32> to vector<1x128xf32>
    %429 = vector.broadcast %428 : vector<1x128xf32> to vector<16x128xf32>
    %430 = arith.mulf %426, %429 : vector<16x128xf32>
    %431 = arith.addf %342, %430 : vector<16x128xf32>
    %c50 = arith.constant 50 : index
    %c0_204 = arith.constant 0 : index
    %c0_205 = arith.constant 0 : index
    %432 = vector.load %arg5[%c50, %c0_204, %c0_205] : memref<64x1x128xf32, #tpu.memory_space<vmem>>, vector<1x1x128xf32>
    %433 = vector.shape_cast %432 : vector<1x1x128xf32> to vector<1x128xf32>
    %434 = vector.broadcast %433 : vector<1x128xf32> to vector<16x128xf32>
    %435 = arith.mulf %424, %434 : vector<16x128xf32>
    %436 = arith.addf %431, %435 : vector<16x128xf32>
    %c56 = arith.constant 56 : index
    %c0_206 = arith.constant 0 : index
    %c0_207 = arith.constant 0 : index
    %437 = vector.load %arg5[%c56, %c0_206, %c0_207] : memref<64x1x128xf32, #tpu.memory_space<vmem>>, vector<1x1x128xf32>
    %438 = vector.shape_cast %437 : vector<1x1x128xf32> to vector<1x128xf32>
    %439 = vector.broadcast %438 : vector<1x128xf32> to vector<16x128xf32>
    %440 = arith.mulf %424, %439 : vector<16x128xf32>
    %441 = arith.addf %364, %440 : vector<16x128xf32>
    %c15_i32_208 = arith.constant 15 : i32
    %442 = tpu.dynamic_rotate %424 by %c15_i32_208 dim 0 : vector<16x128xf32>, i32 -> vector<16x128xf32>
    %443 = arith.mulf %442, %19 : vector<16x128xf32>
    %c58 = arith.constant 58 : index
    %c0_209 = arith.constant 0 : index
    %c0_210 = arith.constant 0 : index
    %444 = vector.load %arg5[%c58, %c0_209, %c0_210] : memref<64x1x128xf32, #tpu.memory_space<vmem>>, vector<1x1x128xf32>
    %445 = vector.shape_cast %444 : vector<1x1x128xf32> to vector<1x128xf32>
    %446 = vector.broadcast %445 : vector<1x128xf32> to vector<16x128xf32>
    %447 = arith.mulf %443, %446 : vector<16x128xf32>
    %448 = arith.addf %441, %447 : vector<16x128xf32>
    %c1_i32_211 = arith.constant 1 : i32
    %449 = tpu.dynamic_rotate %421 by %c1_i32_211 dim 0 : vector<16x128xf32>, i32 -> vector<16x128xf32>
    %450 = arith.mulf %449, %17 : vector<16x128xf32>
    %c49 = arith.constant 49 : index
    %c0_212 = arith.constant 0 : index
    %c0_213 = arith.constant 0 : index
    %451 = vector.load %arg5[%c49, %c0_212, %c0_213] : memref<64x1x128xf32, #tpu.memory_space<vmem>>, vector<1x1x128xf32>
    %452 = vector.shape_cast %451 : vector<1x1x128xf32> to vector<1x128xf32>
    %453 = vector.broadcast %452 : vector<1x128xf32> to vector<16x128xf32>
    %454 = arith.mulf %450, %453 : vector<16x128xf32>
    %455 = arith.addf %436, %454 : vector<16x128xf32>
    %c52 = arith.constant 52 : index
    %c0_214 = arith.constant 0 : index
    %c0_215 = arith.constant 0 : index
    %456 = vector.load %arg5[%c52, %c0_214, %c0_215] : memref<64x1x128xf32, #tpu.memory_space<vmem>>, vector<1x1x128xf32>
    %457 = vector.shape_cast %456 : vector<1x1x128xf32> to vector<1x128xf32>
    %458 = vector.broadcast %457 : vector<1x128xf32> to vector<16x128xf32>
    %459 = arith.mulf %450, %458 : vector<16x128xf32>
    %460 = arith.addf %384, %459 : vector<16x128xf32>
    %c51 = arith.constant 51 : index
    %c0_216 = arith.constant 0 : index
    %c0_217 = arith.constant 0 : index
    %461 = vector.load %arg5[%c51, %c0_216, %c0_217] : memref<64x1x128xf32, #tpu.memory_space<vmem>>, vector<1x1x128xf32>
    %462 = vector.shape_cast %461 : vector<1x1x128xf32> to vector<1x128xf32>
    %463 = vector.broadcast %462 : vector<1x128xf32> to vector<16x128xf32>
    %464 = arith.mulf %421, %463 : vector<16x128xf32>
    %465 = arith.addf %455, %464 : vector<16x128xf32>
    %c54 = arith.constant 54 : index
    %c0_218 = arith.constant 0 : index
    %c0_219 = arith.constant 0 : index
    %466 = vector.load %arg5[%c54, %c0_218, %c0_219] : memref<64x1x128xf32, #tpu.memory_space<vmem>>, vector<1x1x128xf32>
    %467 = vector.shape_cast %466 : vector<1x1x128xf32> to vector<1x128xf32>
    %468 = vector.broadcast %467 : vector<1x128xf32> to vector<16x128xf32>
    %469 = arith.mulf %421, %468 : vector<16x128xf32>
    %470 = arith.addf %460, %469 : vector<16x128xf32>
    %c57 = arith.constant 57 : index
    %c0_220 = arith.constant 0 : index
    %c0_221 = arith.constant 0 : index
    %471 = vector.load %arg5[%c57, %c0_220, %c0_221] : memref<64x1x128xf32, #tpu.memory_space<vmem>>, vector<1x1x128xf32>
    %472 = vector.shape_cast %471 : vector<1x1x128xf32> to vector<1x128xf32>
    %473 = vector.broadcast %472 : vector<1x128xf32> to vector<16x128xf32>
    %474 = arith.mulf %421, %473 : vector<16x128xf32>
    %475 = arith.addf %448, %474 : vector<16x128xf32>
    %c60 = arith.constant 60 : index
    %c0_222 = arith.constant 0 : index
    %c0_223 = arith.constant 0 : index
    %476 = vector.load %arg5[%c60, %c0_222, %c0_223] : memref<64x1x128xf32, #tpu.memory_space<vmem>>, vector<1x1x128xf32>
    %477 = vector.shape_cast %476 : vector<1x1x128xf32> to vector<1x128xf32>
    %478 = vector.broadcast %477 : vector<1x128xf32> to vector<16x128xf32>
    %479 = arith.mulf %421, %478 : vector<16x128xf32>
    %480 = arith.addf %396, %479 : vector<16x128xf32>
    %c15_i32_224 = arith.constant 15 : i32
    %481 = tpu.dynamic_rotate %421 by %c15_i32_224 dim 0 : vector<16x128xf32>, i32 -> vector<16x128xf32>
    %482 = arith.mulf %481, %19 : vector<16x128xf32>
    %c59 = arith.constant 59 : index
    %c0_225 = arith.constant 0 : index
    %c0_226 = arith.constant 0 : index
    %483 = vector.load %arg5[%c59, %c0_225, %c0_226] : memref<64x1x128xf32, #tpu.memory_space<vmem>>, vector<1x1x128xf32>
    %484 = vector.shape_cast %483 : vector<1x1x128xf32> to vector<1x128xf32>
    %485 = vector.broadcast %484 : vector<1x128xf32> to vector<16x128xf32>
    %486 = arith.mulf %482, %485 : vector<16x128xf32>
    %487 = arith.addf %475, %486 : vector<16x128xf32>
    %c62 = arith.constant 62 : index
    %c0_227 = arith.constant 0 : index
    %c0_228 = arith.constant 0 : index
    %488 = vector.load %arg5[%c62, %c0_227, %c0_228] : memref<64x1x128xf32, #tpu.memory_space<vmem>>, vector<1x1x128xf32>
    %489 = vector.shape_cast %488 : vector<1x1x128xf32> to vector<1x128xf32>
    %490 = vector.broadcast %489 : vector<1x128xf32> to vector<16x128xf32>
    %491 = arith.mulf %482, %490 : vector<16x128xf32>
    %492 = arith.addf %480, %491 : vector<16x128xf32>
    %c127_i32_229 = arith.constant 127 : i32
    %493 = tpu.dynamic_rotate %421 by %c127_i32_229 dim 1 : vector<16x128xf32>, i32 -> vector<16x128xf32>
    %494 = vector.broadcast %23 : vector<1x128xf32> to vector<16x128xf32>
    %495 = arith.mulf %493, %494 : vector<16x128xf32>
    %c1_i32_230 = arith.constant 1 : i32
    %496 = tpu.dynamic_rotate %495 by %c1_i32_230 dim 0 : vector<16x128xf32>, i32 -> vector<16x128xf32>
    %497 = arith.mulf %496, %17 : vector<16x128xf32>
    %c53 = arith.constant 53 : index
    %c0_231 = arith.constant 0 : index
    %c0_232 = arith.constant 0 : index
    %498 = vector.load %arg5[%c53, %c0_231, %c0_232] : memref<64x1x128xf32, #tpu.memory_space<vmem>>, vector<1x1x128xf32>
    %499 = vector.shape_cast %498 : vector<1x1x128xf32> to vector<1x128xf32>
    %500 = vector.broadcast %499 : vector<1x128xf32> to vector<16x128xf32>
    %501 = arith.mulf %497, %500 : vector<16x128xf32>
    %502 = arith.addf %470, %501 : vector<16x128xf32>
    %c55 = arith.constant 55 : index
    %c0_233 = arith.constant 0 : index
    %c0_234 = arith.constant 0 : index
    %503 = vector.load %arg5[%c55, %c0_233, %c0_234] : memref<64x1x128xf32, #tpu.memory_space<vmem>>, vector<1x1x128xf32>
    %504 = vector.shape_cast %503 : vector<1x1x128xf32> to vector<1x128xf32>
    %505 = vector.broadcast %504 : vector<1x128xf32> to vector<16x128xf32>
    %506 = arith.mulf %495, %505 : vector<16x128xf32>
    %507 = arith.addf %502, %506 : vector<16x128xf32>
    %c61 = arith.constant 61 : index
    %c0_235 = arith.constant 0 : index
    %c0_236 = arith.constant 0 : index
    %508 = vector.load %arg5[%c61, %c0_235, %c0_236] : memref<64x1x128xf32, #tpu.memory_space<vmem>>, vector<1x1x128xf32>
    %509 = vector.shape_cast %508 : vector<1x1x128xf32> to vector<1x128xf32>
    %510 = vector.broadcast %509 : vector<1x128xf32> to vector<16x128xf32>
    %511 = arith.mulf %495, %510 : vector<16x128xf32>
    %512 = arith.addf %492, %511 : vector<16x128xf32>
    %c15_i32_237 = arith.constant 15 : i32
    %513 = tpu.dynamic_rotate %495 by %c15_i32_237 dim 0 : vector<16x128xf32>, i32 -> vector<16x128xf32>
    %514 = arith.mulf %513, %19 : vector<16x128xf32>
    %c63 = arith.constant 63 : index
    %c0_238 = arith.constant 0 : index
    %c0_239 = arith.constant 0 : index
    %515 = vector.load %arg5[%c63, %c0_238, %c0_239] : memref<64x1x128xf32, #tpu.memory_space<vmem>>, vector<1x1x128xf32>
    %516 = vector.shape_cast %515 : vector<1x1x128xf32> to vector<1x128xf32>
    %517 = vector.broadcast %516 : vector<1x128xf32> to vector<16x128xf32>
    %518 = arith.mulf %514, %517 : vector<16x128xf32>
    %519 = arith.addf %512, %518 : vector<16x128xf32>
    %cst_240 = arith.constant 0.000000e+00 : f32
    %520 = vector.broadcast %cst_240 : f32 to vector<16x128xf32>
    %c64_i32 = arith.constant 64 : i32
    %521 = tpu.dynamic_rotate %465 by %c64_i32 dim 1 : vector<16x128xf32>, i32 -> vector<16x128xf32>
    %522 = arith.addf %465, %521 : vector<16x128xf32>
    %c32_i32 = arith.constant 32 : i32
    %523 = tpu.dynamic_rotate %522 by %c32_i32 dim 1 : vector<16x128xf32>, i32 -> vector<16x128xf32>
    %524 = arith.addf %522, %523 : vector<16x128xf32>
    %c0_241 = arith.constant 0 : index
    %c0_242 = arith.constant 0 : index
    %c0_243 = arith.constant 0 : index
    %525 = vector.load %arg8[%c0_241, %c0_242, %c0_243] : memref<4x1x128xf32, #tpu.memory_space<vmem>>, vector<1x1x128xf32>
    %526 = vector.shape_cast %525 : vector<1x1x128xf32> to vector<1x128xf32>
    %527 = vector.broadcast %526 : vector<1x128xf32> to vector<16x128xf32>
    %528 = arith.mulf %527, %524 : vector<16x128xf32>
    %529 = arith.addf %520, %528 : vector<16x128xf32>
    %c64_i32_244 = arith.constant 64 : i32
    %530 = tpu.dynamic_rotate %507 by %c64_i32_244 dim 1 : vector<16x128xf32>, i32 -> vector<16x128xf32>
    %531 = arith.addf %507, %530 : vector<16x128xf32>
    %c32_i32_245 = arith.constant 32 : i32
    %532 = tpu.dynamic_rotate %531 by %c32_i32_245 dim 1 : vector<16x128xf32>, i32 -> vector<16x128xf32>
    %533 = arith.addf %531, %532 : vector<16x128xf32>
    %c1_246 = arith.constant 1 : index
    %c0_247 = arith.constant 0 : index
    %c0_248 = arith.constant 0 : index
    %534 = vector.load %arg8[%c1_246, %c0_247, %c0_248] : memref<4x1x128xf32, #tpu.memory_space<vmem>>, vector<1x1x128xf32>
    %535 = vector.shape_cast %534 : vector<1x1x128xf32> to vector<1x128xf32>
    %536 = vector.broadcast %535 : vector<1x128xf32> to vector<16x128xf32>
    %537 = arith.mulf %536, %533 : vector<16x128xf32>
    %538 = arith.addf %529, %537 : vector<16x128xf32>
    %c64_i32_249 = arith.constant 64 : i32
    %539 = tpu.dynamic_rotate %487 by %c64_i32_249 dim 1 : vector<16x128xf32>, i32 -> vector<16x128xf32>
    %540 = arith.addf %487, %539 : vector<16x128xf32>
    %c32_i32_250 = arith.constant 32 : i32
    %541 = tpu.dynamic_rotate %540 by %c32_i32_250 dim 1 : vector<16x128xf32>, i32 -> vector<16x128xf32>
    %542 = arith.addf %540, %541 : vector<16x128xf32>
    %c2_251 = arith.constant 2 : index
    %c0_252 = arith.constant 0 : index
    %c0_253 = arith.constant 0 : index
    %543 = vector.load %arg8[%c2_251, %c0_252, %c0_253] : memref<4x1x128xf32, #tpu.memory_space<vmem>>, vector<1x1x128xf32>
    %544 = vector.shape_cast %543 : vector<1x1x128xf32> to vector<1x128xf32>
    %545 = vector.broadcast %544 : vector<1x128xf32> to vector<16x128xf32>
    %546 = arith.mulf %545, %542 : vector<16x128xf32>
    %547 = arith.addf %538, %546 : vector<16x128xf32>
    %c64_i32_254 = arith.constant 64 : i32
    %548 = tpu.dynamic_rotate %519 by %c64_i32_254 dim 1 : vector<16x128xf32>, i32 -> vector<16x128xf32>
    %549 = arith.addf %519, %548 : vector<16x128xf32>
    %c32_i32_255 = arith.constant 32 : i32
    %550 = tpu.dynamic_rotate %549 by %c32_i32_255 dim 1 : vector<16x128xf32>, i32 -> vector<16x128xf32>
    %551 = arith.addf %549, %550 : vector<16x128xf32>
    %c3_256 = arith.constant 3 : index
    %c0_257 = arith.constant 0 : index
    %c0_258 = arith.constant 0 : index
    %552 = vector.load %arg8[%c3_256, %c0_257, %c0_258] : memref<4x1x128xf32, #tpu.memory_space<vmem>>, vector<1x1x128xf32>
    %553 = vector.shape_cast %552 : vector<1x1x128xf32> to vector<1x128xf32>
    %554 = vector.broadcast %553 : vector<1x128xf32> to vector<16x128xf32>
    %555 = arith.mulf %554, %551 : vector<16x128xf32>
    %556 = arith.addf %547, %555 : vector<16x128xf32>
    %c0_259 = arith.constant 0 : index
    %557 = memref.load %arg2[%c0_259] : memref<1xf32, #tpu.memory_space<smem>>
    %558 = vector.broadcast %557 : f32 to vector<16x128xf32>
    %559 = arith.addf %556, %558 : vector<16x128xf32>
    %cst_260 = arith.constant 0.000000e+00 : f32
    %560 = vector.broadcast %cst_260 : f32 to vector<16x128xf32>
    %561 = arith.maximumf %559, %560 : vector<16x128xf32>
    %c0_261 = arith.constant 0 : index
    %c0_262 = arith.constant 0 : index
    %c0_263 = arith.constant 0 : index
    %562 = vector.load %arg9[%c0_261, %c0_262, %c0_263] : memref<1x16x128xf32, #tpu.memory_space<vmem>>, vector<1x16x128xf32>
    %563 = vector.shape_cast %562 : vector<1x16x128xf32> to vector<16x128xf32>
    %564 = vector.shape_cast %561 : vector<16x128xf32> to vector<1x16x128xf32>
    tpu.vector_store %arg9[%c0_261, %c0_262, %c0_263], %564 {strides = array<i32>} : memref<1x16x128xf32, #tpu.memory_space<vmem>>, vector<1x16x128xf32>,
    return
  }
  func.func @transform_0(%arg0: i32) -> i32 {
    %c0_i32 = arith.constant 0 : i32
    %c0_i32_0 = arith.constant 0 : i32
    return %c0_i32 : i32
  }
  func.func @transform_1(%arg0: i32) -> i32 {
    %c0_i32 = arith.constant 0 : i32
    %c0_i32_0 = arith.constant 0 : i32
    return %c0_i32 : i32
  }
  func.func @transform_2(%arg0: i32) -> (i32, i32, i32) {
    %c0_i32 = arith.constant 0 : i32
    %c0_i32_0 = arith.constant 0 : i32
    %c0_i32_1 = arith.constant 0 : i32
    %c0_i32_2 = arith.constant 0 : i32
    return %c0_i32, %c0_i32_0, %c0_i32_1 : i32, i32, i32
  }
  func.func @transform_3(%arg0: i32) -> (i32, i32, i32) {
    %c0_i32 = arith.constant 0 : i32
    %c0_i32_0 = arith.constant 0 : i32
    %c0_i32_1 = arith.constant 0 : i32
    %c0_i32_2 = arith.constant 0 : i32
    return %c0_i32, %c0_i32_0, %c0_i32_1 : i32, i32, i32
  }
  func.func @transform_4(%arg0: i32) -> (i32, i32, i32) {
    %c0_i32 = arith.constant 0 : i32
    %c0_i32_0 = arith.constant 0 : i32
    %c0_i32_1 = arith.constant 0 : i32
    %c0_i32_2 = arith.constant 0 : i32
    return %c0_i32, %c0_i32_0, %c0_i32_1 : i32, i32, i32
  }
  func.func @transform_5(%arg0: i32) -> (i32, i32, i32) {
    %c0_i32 = arith.constant 0 : i32
    %c0_i32_0 = arith.constant 0 : i32
    %c0_i32_1 = arith.constant 0 : i32
    %c0_i32_2 = arith.constant 0 : i32
    return %c0_i32, %c0_i32_0, %c0_i32_1 : i32, i32, i32
  }
  func.func @transform_6(%arg0: i32) -> (i32, i32, i32) {
    %c0_i32 = arith.constant 0 : i32
    %c0_i32_0 = arith.constant 0 : i32
    %c0_i32_1 = arith.constant 0 : i32
    %c0_i32_2 = arith.constant 0 : i32
    return %c0_i32, %c0_i32_0, %c0_i32_1 : i32, i32, i32
  }
  func.func @transform_7(%arg0: i32) -> (i32, i32, i32) {
    %c0_i32 = arith.constant 0 : i32
    %c0_i32_0 = arith.constant 0 : i32
    %c0_i32_1 = arith.constant 0 : i32
    %c0_i32_2 = arith.constant 0 : i32
    return %c0_i32, %c0_i32_0, %c0_i32_1 : i32, i32, i32
  }
  func.func @transform_8(%arg0: i32) -> (i32, i32, i32) {
    %c0_i32 = arith.constant 0 : i32
    %c0_i32_0 = arith.constant 0 : i32
    %c0_i32_1 = arith.constant 0 : i32
    return %arg0, %c0_i32, %c0_i32_0 : i32, i32, i32
  }
}

</mosaic_0001>

<bundles_post_ra>
// kernel: decoder_forward_pallas.1
= control target key start
LH: loop header
LB: loop body
LE: loop exit
PB: predicated region body
PF: predicated region fallthrough
CT: control target
= control target key end

     0   :  { %s2863_s0 = inlined_call_operand.vmem [shape: f32[8], index: 0, kind: input, shape index: {}]   ;;  %s2864_s1 = inlined_call_operand.<no memory space> [shape: f32[1], index: 1, kind: input, shape index: {}]   ;;  %s2865_s2 = inlined_call_operand.vmem [shape: f32[16,16,128], index: 2, kind: input, shape index: {}]   ;;  %s2866_s3 = inlined_call_operand.vmem [shape: f32[4,1,128], index: 3, kind: input, shape index: {}]   ;;  %s2867_s4 = inlined_call_operand.vmem [shape: f32[64,1,128], index: 4, kind: input, shape index: {}]   ;;  %s2868_s5 = inlined_call_operand.vmem [shape: f32[2,16,128], index: 5, kind: input, shape index: {}]   ;;  %s2869_s6 = inlined_call_operand.vmem [shape: f32[2,1,128], index: 6, kind: input, shape index: {}]   ;;  %s2870_s7 = inlined_call_operand.vmem [shape: f32[4,1,128], index: 7, kind: input, shape index: {}]   ;;  %s2871_s8 = inlined_call_operand.vmem [shape: f32[2,16,128], index: 8, kind: output, shape index: {}]  }
   0x1   :  { %13 = sst [smem:[#allocation2]] %s2864_s1 }
   0x2   :  { %14 = vsyncpa [#allocation4], 0  ;;  %s1895_s29 = smov 0  }
   0x3 LB: > { %s1901_s30 = sadd.s32 4294967295, %s1840_s29   ;;  %p1606_p0 = scmp.ge.s32.totalorder %s1840_s29, 1  ;;  %s1840_s29 = sphi %s1895_s29, %s20_s29  }
   0x4   : > { %p219_p1 = scmp.lt.s32.totalorder %s1840_s29, 3  ;;  %s232_s1 = sshll.u32 %s2863_s0, 4  ;;  %s233_s1 = int_to_ptr.vmem [resolvable:$true] %s232_s1 }
   0x5   : > { %p1800_p3 = scmp.eq.s32.totalorder %s1901_s30, 0  ;;  %s1815_s12 = scalar_lea.vmem %s233_s1, 16 }
   0x6   : > { %p1908_p2 = pnand %p1606_p0, %p219_p1  ;;  %p1816_p6 = scmp.ne.s32.totalorder %s233_s1, %s1815_s12 }
   0x7   : > { %p1823_p10 = scmp.lt.s32.totalorder %s233_s1, %s233_s1  ;;  %p1824_p11 = scmp.lt.s32.totalorder %s1815_s12, %s1815_s12 }
   0x8   : > { %p1796_p4 = pneg %p1908_p2 }
   0x9   : > { %p1825_p12 = por %p1824_p11, %p1823_p10 }
   0xa   : > { %p1797_p5 = pnand %p1800_p3, %p1796_p4 }
   0xc   : > { %p1817_p7 = pneg %p1797_p5 }
   0xe   : > { %p1818_p8 = pnand %p1817_p7, %p1816_p6 }
  0x10   : > { %p1819_p9 = pneg %p1818_p8 }
  0x12   : > { %p1826_p13 = pnand %p1825_p12, %p1819_p9 }
  0x14   : > { %1829 = shalt.err (!%p1826_p13)
}
  0x15   : > { %s1842_s13 = smov [#allocation3]   ;;  %266 = sbr.rel (%p1908_p2) target bundleno = 494 (0x1ee), region = 52 }
  0x16   : > { %1799 = dma.vmem_to_smem (!%p1797_p5), %s233_s1, 16, %s1842_s13, [#allocation4]  }
  0x1c   : > { %1835 = dma.done.wait (%p1800_p3), [#allocation4], 16  }
  0x1d   : > { %1837 = vsyncadd (%p1800_p3), [#allocation4], 4294967280 }
  0x1e   : > { %272 = sfence }
  0x1f   : > { %s1612_s14 = sshll.u32 %s1901_s30, 2  ;;  %v318_v0 = vld [vmem:[%s2865_s2] sm:$0xff]  ;;  %v319_v1 = vld [vmem:[%s2865_s2 + $0x8] sm:$0xff]  ;;  %v1617_v3 = vld [vmem:[%s2865_s2 + $0x10] sm:$0xff]  ;;  %v371_v44 = vlaneseq  ;;  %s1843_s23 = smov 127  }
  0x20   : > { %s302_s15 = sld [smem:[#allocation3 + %s1612_s14]]  ;;  %s303_s16 = sadd.s32 1, %s1612_s14  ;;  %v1658_v2 = vld [vmem:[%s2865_s2 + $0x48] sm:$0xff]  ;;  %v1618_v4 = vld [vmem:[%s2865_s2 + $0x18] sm:$0xff]  ;;  %v1616_v6 = vld [vmem:[%s2866_s3] ss:$0 sm:$0xff] }
  0x21   : > { %s304_s17 = sld [smem:[#allocation3 + %s303_s16]]  ;;  %s305_s18 = sadd.s32 2, %s1612_s14  ;;  %v1661_v5 = vld [vmem:[%s2865_s2 + $0x58] sm:$0xff]  ;;  %v1619_v8 = vld [vmem:[%s2865_s2 + $0x20] sm:$0xff]  ;;  %v1621_v11 = vld [vmem:[%s2865_s2 + $0x30] sm:$0xff] }
  0x22   : > { %s306_s19 = sld [smem:[#allocation3 + %s305_s18]]  ;;  %s307_s20 = sadd.s32 3, %s1612_s14  ;;  %v1620_v13 = vld [vmem:[%s2865_s2 + $0x28] sm:$0xff]  ;;  %v1659_v14 = vld [vmem:[%s2866_s3 + $0x1] ss:$0 sm:$0xff]  ;;  %v1622_v19 = vld [vmem:[%s2865_s2 + $0x38] sm:$0xff] }
  0x23   : > { %s308_s21 = sld [smem:[#allocation3 + %s307_s20]]  ;;  %v1663_v21 = vld [vmem:[%s2865_s2 + $0x68] sm:$0xff]  ;;  %v1657_v26 = vld [vmem:[%s2865_s2 + $0x40] sm:$0xff]  ;;  %v1660_v27 = vld [vmem:[%s2865_s2 + $0x50] sm:$0xff]  ;;  %s1844_s24 = smov 1  }
  0x24   : > { %v1665_v31 = vld [vmem:[%s2865_s2 + $0x78] sm:$0xff]  ;;  %v1700_v32 = vld [vmem:[%s2865_s2 + $0x88] sm:$0xff]  ;;  %v1662_v37 = vld [vmem:[%s2865_s2 + $0x60] sm:$0xff]  ;;  %s1845_s26 = smov 64   ;;  %s1846_s10 = smov 32  }
  0x25   : > { %v1703_v38 = vld [vmem:[%s2865_s2 + $0x98] sm:$0xff]  ;;  %v1664_v42 = vld [vmem:[%s2865_s2 + $0x70] sm:$0xff]  ;;  %v1701_v43 = vld [vmem:[%s2866_s3 + $0x2] ss:$0 sm:$0xff]  ;;  %s2849_s13 = sld [smem:[#allocation2]]  ;;  %p296_p0 = scmp.lt.s32.totalorder %s1901_s30, 1 }
  0x26   : > { %v1945_v7 = vstv %s302_s15  ;;  %v1705_v49 = vld [vmem:[%s2865_s2 + $0xa8] sm:$0xff]  ;;  %v1699_v50 = vld [vmem:[%s2865_s2 + $0x80] sm:$0xff]  ;;  %v1702_v51 = vld [vmem:[%s2865_s2 + $0x90] sm:$0xff] }
  0x27   : > { %v321_v9 = vmul.f32 %v1945_v7, %v318_v0  ;;  %v1951_v10 = vstv %s304_s17  ;;  %v322_v12 = vmul.f32 %v1945_v7, %v319_v1  ;;  %v618_v15 = vmul.f32 %v1658_v2, %v1945_v7  ;;  %v1704_v0 = vld [vmem:[%s2865_s2 + $0xa0] sm:$0xff]  ;;  %v1742_v1 = vld [vmem:[%s2865_s2 + $0xc8] sm:$0xff]  ;;  %s2950_s30 = smov (!%p296_p0, %s1901_s30), 1 }
  0x28   : > { %v335_v16 = vmul.f32 %v1617_v3, %v1951_v10  ;;  %v1965_v17 = vstv %s306_s19  ;;  %v336_v18 = vmul.f32 %v1618_v4, %v1951_v10  ;;  %v631_v20 = vmul.f32 %v1661_v5, %v1951_v10  ;;  %v1707_v4 = vld [vmem:[%s2865_s2 + $0xb8] sm:$0xff]  ;;  %s1791_s18 = sshll.u32 %s2950_s30, 4 }
  0x29   : > { %v329_v22 = vadd.f32 %v1616_v6, %v321_v9  ;;  %v343_v23 = vmul.f32 %v1619_v8, %v1965_v17  ;;  %v1976_v24 = vstv %s308_s21  ;;  %v330_v25 = vadd.f32 %v1616_v6, %v322_v12  ;;  %v1743_v9 = vld [vmem:[%s2866_s3 + $0x3] ss:$0 sm:$0xff]  ;;  %s300_s15 = scalar_lea.vmem %s2871_s8, %s1791_s18 }
  0x2a   : > { %v351_v28 = vmul.f32 %v1621_v11, %v1976_v24  ;;  %v344_v29 = vmul.f32 %v1620_v13, %v1965_v17  ;;  %v626_v30 = vadd.f32 %v1659_v14, %v618_v15  ;;  %v352_v35 = vmul.f32 %v1622_v19, %v1976_v24  ;;  %v1745_v11 = vld [vmem:[%s2865_s2 + $0xd8] sm:$0xff]  ;;  %v1741_v12 = vld [vmem:[%s2865_s2 + $0xc0] sm:$0xff] }
  0x2b   : > { %v337_v33 = vadd.f32 %v335_v16, %v329_v22  ;;  %v338_v34 = vadd.f32 %v336_v18, %v330_v25  ;;  %v638_v36 = vmul.f32 %v1663_v21, %v1965_v17  ;;  %v617_v40 = vmul.f32 %v1657_v26, %v1945_v7  ;;  %v1744_v18 = vld [vmem:[%s2865_s2 + $0xd0] sm:$0xff] }
  0x2c   : > { %v633_v39 = vadd.f32 %v631_v20, %v626_v30  ;;  %v630_v41 = vmul.f32 %v1660_v27, %v1951_v10  ;;  %v645_v47 = vmul.f32 %v1665_v31, %v1976_v24  ;;  %v896_v48 = vmul.f32 %v1700_v32, %v1945_v7  ;;  %v1747_v27 = vld [vmem:[%s2865_s2 + $0xe8] sm:$0xff]  ;;  %v1746_v31 = vld [vmem:[%s2865_s2 + $0xe0] sm:$0xff] }
  0x2d   : > { %v345_v45 = vadd.f32 %v343_v23, %v337_v33  ;;  %v346_v46 = vadd.f32 %v344_v29, %v338_v34  ;;  %v625_v53 = vadd.f32 %v1659_v14, %v617_v40  ;;  %v637_v54 = vmul.f32 %v1662_v37, %v1965_v17  ;;  %v1706_v23 = vld [vmem:[%s2865_s2 + $0xb0] sm:$0xff]  ;;  %v1642_v32 = vld [vmem:[%s2867_s4 + $0xc] ss:$0 sm:$0xff] }
  0x2e   : > { %v640_v52 = vadd.f32 %v638_v36, %v633_v39  ;;  %v909_v55 = vmul.f32 %v1703_v38, %v1951_v10  ;;  %v644_v58 = vmul.f32 %v1664_v42, %v1976_v24  ;;  %v904_v59 = vadd.f32 %v1701_v43, %v896_v48  ;;  %v2089_v38 = vld [vmem:[%s2868_s5 + $0x10] sm:$0xff] }
  0x2f   : > { %v353_v56 = vadd.f32 %v351_v28, %v345_v45  ;;  %v354_v57 = vadd.f32 %v352_v35, %v346_v46  ;;  %v632_v60 = vadd.f32 %v630_v41, %v625_v53  ;;  %v916_v61 = vmul.f32 %v1705_v49, %v1965_v17  ;;  %v1749_v41 = vld [vmem:[%s2865_s2 + $0xf8] sm:$0xff]  ;;  %v1748_v46 = vld [vmem:[%s2865_s2 + $0xf0] sm:$0xff] }
  0x30   : > { %v895_v62 = vmul.f32 %v1699_v50, %v1945_v7  ;;  %v908_v63 = vmul.f32 %v1702_v51, %v1951_v10  ;;  %v911_v3 = vadd.f32 %v909_v55, %v904_v59  ;;  %v647_v5 = vadd.f32 %v645_v47, %v640_v52  ;;  %v1646_v47 = vld [vmem:[%s2867_s4 + $0xe] ss:$0 sm:$0xff]  ;;  %v1638_v55 = vld [vmem:[%s2867_s4 + $0x6] ss:$0 sm:$0xff] }
  0x31   : > { %v2031_v2 = vmax.f32 %v353_v56, 0.0  ;;  %v639_v6 = vadd.f32 %v637_v54, %v632_v60  ;;  %v2045_v13 = vshrl.u32 %v371_v44, 7  ;;  %v2051_v14 = vmax.f32 %v354_v57, 0.0  ;;  %v2121_v54 = vld [vmem:[%s2868_s5] sm:$0xff] }
  0x32   : > { %v903_v8 = vadd.f32 %v1701_v43, %v895_v62  ;;  %v915_v15 = vmul.f32 %v1704_v0, %v1965_v17  ;;  %v1174_v16 = vmul.f32 %v1742_v1, %v1945_v7  ;;  %v918_v20 = vadd.f32 %v916_v61, %v911_v3  ;;  %v2137_v62 = vld [vmem:[%s2868_s5 + $0x8] sm:$0xff]  ;;  %v1634_v1 = vld [vmem:[%s2867_s4 + $0x4] ss:$0 sm:$0xff] }
  0x33   : > { %540 = vrot.lane.b32.xlu1 %v2031_v2, %s1843_s23  ;;  %357 = vrot.lane.b32.xlu0 %v2031_v2, %s1844_s24  ;;  %v646_v19 = vadd.f32 %v644_v58, %v639_v6  ;;  %v923_v21 = vmul.f32 %v1707_v4, %v1976_v24  ;;  %v1187_v26 = vmul.f32 %v1745_v11, %v1951_v10  ;;  %v2067_v29 = vmax.f32 %v647_v5, 0.0 }
  0x34   : > { %v910_v22 = vadd.f32 %v908_v63, %v903_v8  ;;  %v1182_v25 = vadd.f32 %v1743_v9, %v1174_v16  ;;  %v1173_v28 = vmul.f32 %v1741_v12, %v1945_v7  ;;  %v1186_v30 = vmul.f32 %v1744_v18, %v1951_v10  ;;  %v2142_v63 = vld [vmem:[%s2868_s5 + $0x18] sm:$0xff] }
  0x35   : > { %vm415_vm0 = vcmp.lt.s32.totalorder %v2045_v13, 7  ;;  %v511_v33 = vrot.slane %v2051_v14, 1  ;;  %v2082_v7 = vmax.f32 %v646_v19, 0.0  ;;  %v922_v34 = vmul.f32 %v1706_v23, %v1976_v24 }
  0x36   : > { %v917_v10 = vadd.f32 %v915_v15, %v910_v22  ;;  %v1181_v35 = vadd.f32 %v1743_v9, %v1173_v28  ;;  %v925_v36 = vadd.f32 %v923_v21, %v918_v20  ;;  %v1194_v37 = vmul.f32 %v1747_v27, %v1965_v17 }
  0x37   : > { %542 = vrot.lane.b32.xlu1 %v2051_v14, %s1843_s23  ;;  %359 = vrot.lane.b32.xlu0 %v2051_v14, %s1844_s24  ;;  %v510_v39 = vrot.slane %v2031_v2, 1  ;;  %v1189_v40 = vadd.f32 %v1187_v26, %v1182_v25  ;;  %v1193_v42 = vmul.f32 %v1746_v31, %v1965_v17  ;;  %v506_v43 = vmul.f32 %v1642_v32, %v2031_v2 }
  0x38   : > { %v433_v44 = vrot.slane %v2051_v14, 7  ;;  %v1188_v45 = vadd.f32 %v1186_v30, %v1181_v35  ;;  %v716_v49 = vrot.slane %v2082_v7, 7  ;;  %v717_v17 = vrot.slane %v2067_v29, 7 }
  0x39   : > { %v512_v48 = vsel %vm415_vm0, %v510_v39, %v511_v33  ;;  %v924_v50 = vadd.f32 %v922_v34, %v917_v10  ;;  %vm373_vm1 = vcmp.lt.s32.totalorder %v2045_v13, 1  ;;  %v432_v52 = vrot.slane %v2031_v2, 7 }
  0x3a   : > { %v2113_v51 = vmul.f32 %v2089_v38, %v512_v48  ;;  %v1201_v53 = vmul.f32 %v1749_v41, %v1976_v24  ;;  %v718_v56 = vsel %vm373_vm1, %v716_v49, %v717_v17  ;;  %v719_v57 = vsel %vm373_vm1, %v717_v17, %v716_v49 }
  0x3b   : > { %652 = vrot.lane.b32.xlu1 %v2067_v29, %s1844_s24  ;;  %650 = vrot.lane.b32.xlu0 %v2082_v7, %s1844_s24  ;;  %v2130_v58 = vmax.f32 %v925_v36, 0.0  ;;  %v1196_v59 = vadd.f32 %v1194_v37, %v1189_v40  ;;  %v1200_v60 = vmul.f32 %v1748_v46, %v1976_v24  ;;  %v1195_v0 = vadd.f32 %v1193_v42, %v1188_v45 }
  0x3c   : > { %v536_v61 = vmul.f32 %v1646_v47, %v2113_v51  ;;  %v434_v24 = vsel %vm373_vm1, %v432_v52, %v433_v44  ;;  %v435_v3 = vsel %vm373_vm1, %v433_v44, %v432_v52  ;;  %v513_v4 = vsel %vm415_vm0, %v511_v33, %v510_v39  ;;  %v1681_v52 = vld [vmem:[%s2867_s4 + $0x16] ss:$0 sm:$0xff] }
  0x3d   : > { %v2157_v5 = vmax.f32 %v924_v50, 0.0  ;;  %v436_v8 = vmul.f32 %v435_v3, %v2121_v54  ;;  %v482_v9 = vmul.f32 %v1638_v55, %v2031_v2  ;;  %v483_v11 = vmul.f32 %v1638_v55, %v2051_v14  ;;  %v1636_v55 = vld [vmem:[%s2867_s4 + $0x3] ss:$0 sm:$0xff] }
  0x3e   : > { %v2159_v6 = vadd.f32 %v536_v61, %v506_v43  ;;  %v507_v12 = vmul.f32 %v1642_v32, %v2051_v14  ;;  %v437_v15 = vmul.f32 %v434_v24, %v2137_v62  ;;  %v515_v16 = vmul.f32 %v2142_v63, %v513_v4  ;;  %v1675_v61 = vld [vmem:[%s2867_s4 + $0x11] ss:$0 sm:$0xff] }
  0x3f   : > { %826 = vrot.lane.b32.xlu1 %v2067_v29, %s1843_s23  ;;  %824 = vrot.lane.b32.xlu0 %v2082_v7, %s1843_s23  ;;  %v458_v18 = vmul.f32 %v1634_v1, %v436_v8  ;;  %v1203_v21 = vadd.f32 %v1201_v53, %v1196_v59  ;;  %v1202_v22 = vadd.f32 %v1200_v60, %v1195_v0  ;;  %v794_v25 = vrot.slane %v2082_v7, 1  ;;  %v1677_v53 = vld [vmem:[%s2867_s4 + $0x14] ss:$0 sm:$0xff]  ;;  %v1632_v59 = vld [vmem:[%s2867_s4 + $0x1] ss:$0 sm:$0xff] }
  0x40   : > { %v459_v19 = vmul.f32 %v1634_v1, %v437_v15  ;;  %v537_v20 = vmul.f32 %v1646_v47, %v515_v16  ;;  %v795_v28 = vrot.slane %v2067_v29, 1  ;;  %v994_v30 = vrot.slane %v2157_v5, 7  ;;  %v1644_v60 = vld [vmem:[%s2867_s4 + $0xb] ss:$0 sm:$0xff] }
  0x41   : > { %v2171_v23 = vadd.f32 %v482_v9, %v458_v18  ;;  %v995_v31 = vrot.slane %v2130_v58, 7  ;;  %v2185_v32 = vmax.f32 %v1203_v21, 0.0  ;;  %v2187_v33 = vmax.f32 %v1202_v22, 0.0  ;;  %v1719_v22 = vld [vmem:[%s2867_s4 + $0x24] ss:$0 sm:$0xff] }
  0x42   : > { %v2174_v26 = vadd.f32 %v483_v11, %v459_v19  ;;  %v2176_v27 = vadd.f32 %v537_v20, %v507_v12  ;;  %v797_v10 = vsel %vm415_vm0, %v795_v28, %v794_v25  ;;  %v796_v34 = vsel %vm415_vm0, %v794_v25, %v795_v28  ;;  %v1685_v11 = vld [vmem:[%s2867_s4 + $0x1c] ss:$0 sm:$0xff]  ;;  %v1689_v12 = vld [vmem:[%s2867_s4 + $0x1e] ss:$0 sm:$0xff] }
  0x43   : > { %930 = vrot.lane.b32.xlu1 %v2130_v58, %s1844_s24  ;;  %928 = vrot.lane.b32.xlu0 %v2157_v5, %s1844_s24  ;;  %v996_v35 = vsel %vm373_vm1, %v994_v30, %v995_v31  ;;  %v997_v36 = vsel %vm373_vm1, %v995_v31, %v994_v30  ;;  %v1072_v37 = vrot.slane %v2157_v5, 1  ;;  %v1073_v39 = vrot.slane %v2130_v58, 1 }
  0x44   : > { %v1272_v42 = vrot.slane %v2187_v33, 7  ;;  %v1273_v43 = vrot.slane %v2185_v32, 7  ;;  %v1350_v46 = vrot.slane %v2187_v33, 1  ;;  %v1351_v47 = vrot.slane %v2185_v32, 1 }
  0x45   : > { %v1075_v40 = vsel %vm415_vm0, %v1073_v39, %v1072_v37  ;;  %v1074_v41 = vsel %vm415_vm0, %v1072_v37, %v1073_v39  ;;  %v720_v17 = vmul.f32 %v719_v57, %v2121_v54  ;;  %v721_v50 = vmul.f32 %v718_v56, %v2137_v62  ;;  %v1640_v56 = vld [vmem:[%s2867_s4 + $0x9] ss:$0 sm:$0xff]  ;;  %v1717_v39 = vld [vmem:[%s2867_s4 + $0x21] ss:$0 sm:$0xff] }
  0x46   : > { %v1275_v44 = vsel %vm373_vm1, %v1273_v43, %v1272_v42  ;;  %v1274_v45 = vsel %vm373_vm1, %v1272_v42, %v1273_v43  ;;  %v2221_v48 = vsel %vm415_vm0, %v1350_v46, %v1351_v47  ;;  %v2225_v49 = vsel %vm415_vm0, %v1351_v47, %v1350_v46  ;;  %v1727_v42 = vld [vmem:[%s2867_s4 + $0x2c] ss:$0 sm:$0xff] }
  0x47   : > { %1104 = vrot.lane.b32.xlu1 %v2130_v58, %s1843_s23  ;;  %1102 = vrot.lane.b32.xlu0 %v2157_v5, %s1843_s23  ;;  %v2245_v57 = vmul.f32 %v1681_v52, %v2067_v29  ;;  %v2253_v0 = vmul.f32 %v1677_v53, %v720_v17  ;;  %v2255_v1 = vmul.f32 %v1677_v53, %v721_v50 }
  0x48   : > { %v2258_v24 = vmul.f32 %v1636_v55, %v2051_v14  ;;  %v799_v3 = vmul.f32 %v2142_v63, %v797_v10  ;;  %v2262_v4 = vmul.f32 %v1640_v56, %v2051_v14  ;;  %v2264_v9 = vmul.f32 %v1632_v59, %v436_v8 }
  0x49   : > { %v798_v18 = vmul.f32 %v2089_v38, %v796_v34  ;;  %v998_v19 = vmul.f32 %v997_v36, %v2121_v54  ;;  %v2274_v20 = vmul.f32 %v1632_v59, %v437_v15  ;;  %v2276_v21 = vmul.f32 %v1644_v60, %v515_v16  ;;  %v1683_v16 = vld [vmem:[%s2867_s4 + $0x19] ss:$0 sm:$0xff] }
  0x4a   : > { %v2278_v14 = vmul.f32 %v1675_v61, %v720_v17  ;;  %v999_v8 = vmul.f32 %v996_v35, %v2137_v62  ;;  %v2284_v25 = vmul.f32 %v1675_v61, %v721_v50  ;;  %v2287_v28 = vmul.f32 %v1636_v55, %v2031_v2  ;;  %v1731_v50 = vld [vmem:[%s2867_s4 + $0x2e] ss:$0 sm:$0xff] }
  0x4b   : > { %1208 = vrot.lane.b32.xlu1 %v2185_v32, %s1844_s24  ;;  %1206 = vrot.lane.b32.xlu0 %v2187_v33, %s1844_s24  ;;  %v2290_v30 = vmul.f32 %v1640_v56, %v2031_v2  ;;  %v2293_v15 = vmul.f32 %v1644_v60, %v2113_v51  ;;  %v2299_v31 = vmul.f32 %v1685_v11, %v2067_v29  ;;  %v1687_v2 = vld [vmem:[%s2867_s4 + $0x1b] ss:$0 sm:$0xff]  ;;  %v1679_v51 = vld [vmem:[%s2867_s4 + $0x13] ss:$0 sm:$0xff] }
  0x4c   : > { %v2301_v10 = vmul.f32 %v1689_v12, %v799_v3  ;;  %v2304_v34 = vmul.f32 %v1681_v52, %v2082_v7  ;;  %v2307_v35 = vmul.f32 %v1685_v11, %v2082_v7  ;;  %v2315_v36 = vmul.f32 %v1689_v12, %v798_v18  ;;  %v1723_v52 = vld [vmem:[%s2867_s4 + $0x26] ss:$0 sm:$0xff]  ;;  %v1761_v60 = vld [vmem:[%s2867_s4 + $0x34] ss:$0 sm:$0xff]  ;;  %v1725_v11 = vld [vmem:[%s2867_s4 + $0x29] ss:$0 sm:$0xff] }
  0x4d   : > { %v2317_v37 = vmul.f32 %v1719_v22, %v998_v19  ;;  %v1077_v43 = vmul.f32 %v2142_v63, %v1075_v40  ;;  %v1076_v46 = vmul.f32 %v2089_v38, %v1074_v41  ;;  %v2327_v47 = vmul.f32 %v1719_v22, %v999_v8 }
  0x4e   : > { %v2330_v17 = vmul.f32 %v1683_v16, %v2067_v29  ;;  %v1276_v53 = vmul.f32 %v1275_v44, %v2121_v54  ;;  %v1277_v55 = vmul.f32 %v1274_v45, %v2137_v62  ;;  %v2340_v40 = vmul.f32 %v1687_v2, %v799_v3  ;;  %v1765_v44 = vld [vmem:[%s2867_s4 + $0x36] ss:$0 sm:$0xff] }
  0x4f   : > { %1382 = vrot.lane.b32.xlu1 %v2185_v32, %s1843_s23  ;;  %1380 = vrot.lane.b32.xlu0 %v2187_v33, %s1843_s23  ;;  %2875 = vst [vmem:[#allocation6_spill] sm:$0xff] %v2317_v37  ;;  %2876 = vst [vmem:[#allocation7_spill] sm:$0xff] %v2327_v47  ;;  %v2343_v41 = vmul.f32 %v1679_v51, %v2082_v7  ;;  %v2346_v59 = vmul.f32 %v1679_v51, %v2067_v29  ;;  %v2409_v47 = vld [vmem:[%s2869_s6] ss:$0 sm:$0xff] }
  0x50   : > { %2877 = vst [vmem:[#allocation8_spill] sm:$0xff] %v2340_v40  ;;  %v2349_v56 = vmul.f32 %v1683_v16, %v2082_v7  ;;  %v2357_v45 = vmul.f32 %v1687_v2, %v798_v18  ;;  %v2359_v61 = vmul.f32 %v1717_v39, %v998_v19  ;;  %v2362_v3 = vmul.f32 %v1727_v42, %v2130_v58  ;;  %v1721_v7 = vld [vmem:[%s2867_s4 + $0x23] ss:$0 sm:$0xff]  ;;  %v1729_v16 = vld [vmem:[%s2867_s4 + $0x2b] ss:$0 sm:$0xff] }
  0x51   : > { %2878 = vst [vmem:[#allocation9_spill] sm:$0xff] %v2346_v59  ;;  %v2365_v29 = vmul.f32 %v1727_v42, %v2157_v5  ;;  %v2373_v12 = vmul.f32 %v1731_v50, %v1077_v43  ;;  %v2376_v18 = vmul.f32 %v1723_v52, %v2157_v5  ;;  %v2378_v19 = vmul.f32 %v1731_v50, %v1076_v46  ;;  %v2389_v2 = vld [vmem:[%s2869_s6 + $0x1] ss:$0 sm:$0xff]  ;;  %v1759_v50 = vld [vmem:[%s2867_s4 + $0x31] ss:$0 sm:$0xff] }
  0x52   : > { %2879 = vst [vmem:[#allocation10_spill] sm:$0xff] %v2349_v56  ;;  %2880 = vst [vmem:[#allocation11_spill] sm:$0xff] %v2357_v45  ;;  %v2381_v22 = vmul.f32 %v1723_v52, %v2130_v58  ;;  %v2391_v51 = vmul.f32 %v1761_v60, %v1276_v53  ;;  %v2394_v42 = vmul.f32 %v1765_v44, %v2187_v33 }
  0x53   : > { %2881 = vst [vmem:[#allocation12_spill] sm:$0xff] %v2359_v61  ;;  %2882 = vst [vmem:[#allocation13_spill] sm:$0xff] %v2362_v3  ;;  %v2396_v59 = vmul.f32 %v1761_v60, %v1277_v55  ;;  %v1354_v52 = vmul.f32 %v2089_v38, %v2221_v48  ;;  %v1763_v60 = vld [vmem:[%s2867_s4 + $0x33] ss:$0 sm:$0xff]  ;;  %v2420_v48 = vmul.f32 %v1725_v11, %v2157_v5  ;;  %v1773_v61 = vld [vmem:[%s2867_s4 + $0x3e] ss:$0 sm:$0xff] }
  0x54   : > { %2883 = vst [vmem:[#allocation14_spill] sm:$0xff] %v2365_v29  ;;  %2884 = vst [vmem:[#allocation15_spill] sm:$0xff] %v2373_v12  ;;  %v2432_v12 = vmul.f32 %v1765_v44, %v2185_v32  ;;  %v2452_v44 = vld [vmem:[%s2867_s4 + $0x3b] ss:$0 sm:$0xff] }
  0x55   : > { %2885 = vst [vmem:[#allocation16_spill] sm:$0xff] %v2376_v18  ;;  %2886 = vst [vmem:[#allocation17_spill] sm:$0xff] %v2378_v19 }
  0x56   : > { %2887 = vst [vmem:[#allocation18_spill] sm:$0xff] %v2381_v22  ;;  %2888 = vst [vmem:[#allocation19_spill] sm:$0xff] %v2391_v51  ;;  %v1769_v22 = vld [vmem:[%s2867_s4 + $0x3c] ss:$0 sm:$0xff]  ;;  %v2423_v51 = vmul.f32 %v1725_v11, %v2130_v58  ;;  %v2444_v11 = vmul.f32 %v2142_v63, %v2225_v49 }
  0x57   : > { %2889 = vst [vmem:[#allocation20_spill] sm:$0xff] %v2394_v42  ;;  %2890 = vst [vmem:[#allocation21_spill] sm:$0xff] %v2396_v59  ;;  %v2412_v42 = vmul.f32 %v1721_v7, %v2157_v5  ;;  %v2417_v59 = vmul.f32 %v1717_v39, %v999_v8  ;;  %v2435_v8 = vmul.f32 %v1721_v7, %v2130_v58  ;;  %v1767_v39 = vld [vmem:[%s2867_s4 + $0x39] ss:$0 sm:$0xff]  ;;  %v1651_v7 = vld [vmem:[%s2867_s4 + $0x7] ss:$0 sm:$0xff] }
  0x58   : > { %2893 = vst [vmem:[#allocation24_spill] sm:$0xff] %v2420_v48  ;;  %2894 = vst [vmem:[#allocation25_spill] sm:$0xff] %v2423_v51  ;;  %v2437_v5 = vmul.f32 %v1729_v16, %v1076_v46  ;;  %v2454_v58 = vmul.f32 %v1729_v16, %v1077_v43  ;;  %v2457_v46 = vmul.f32 %v1769_v22, %v2187_v33  ;;  %v1626_v43 = vld [vmem:[%s2867_s4 + $0x2] ss:$0 sm:$0xff]  ;;  %v1628_v16 = vld [vmem:[%s2867_s4 + $0x8] ss:$0 sm:$0xff] }
  0x59   : > { %2891 = vst [vmem:[#allocation22_spill] sm:$0xff] %v2412_v42  ;;  %2892 = vst [vmem:[#allocation23_spill] sm:$0xff] %v2417_v59  ;;  %v1653_v42 = vld [vmem:[%s2867_s4 + $0xd] ss:$0 sm:$0xff]  ;;  %v2447_v59 = vmul.f32 %v1759_v50, %v1276_v53  ;;  %v2466_v53 = vmul.f32 %v1759_v50, %v1277_v55  ;;  %v2483_v55 = vmul.f32 %v1769_v22, %v2185_v32 }
  0x5a   : > { %2895 = vst [vmem:[#allocation26_spill] sm:$0xff] %v2432_v12  ;;  %2896 = vst [vmem:[#allocation27_spill] sm:$0xff] %v2435_v8  ;;  %v2468_v8 = vmul.f32 %v1773_v61, %v1354_v52 }
  0x5b   : > { %2897 = vst [vmem:[#allocation28_spill] sm:$0xff] %v2437_v5  ;;  %2898 = vst [vmem:[#allocation29_spill] sm:$0xff] %v2444_v11 }
  0x5c   : > { %2899 = vst [vmem:[#allocation30_spill] sm:$0xff] %v2447_v59  ;;  %2900 = vst [vmem:[#allocation31_spill] sm:$0xff] %v2452_v44  ;;  %v2492_v59 = vmul.f32 %v1773_v61, %v2444_v11 }
  0x5d   : > { %2901 = vst [vmem:[#allocation32_spill] sm:$0xff] %v2454_v58  ;;  %2902 = vst [vmem:[#allocation33_spill] sm:$0xff] %v2457_v46  ;;  %v2477_v46 = vmul.f32 %v1763_v60, %v2185_v32  ;;  %v2489_v58 = vmul.f32 %v1767_v39, %v2185_v32 }
  0x5e   : > { %2904 = vst [vmem:[#allocation35_spill] sm:$0xff] %v2466_v53  ;;  %2905 = vst [vmem:[#allocation36_spill] sm:$0xff] %v2468_v8 }
  0x5f   : > { %2906 = vst [vmem:[#allocation37_spill] sm:$0xff] %v2477_v46  ;;  %2908 = vst [vmem:[#allocation39_spill] sm:$0xff] %v2483_v55 }
  0x60   : > { %2910 = vst [vmem:[#allocation41_spill] sm:$0xff] %v2489_v58  ;;  %2911 = vst [vmem:[#allocation42_spill] sm:$0xff] %v2492_v59 }
  0xa5   : > { %v541_v19 = vpop.permute.xlu1 %540  ;;  %v358_v29 = vpop.permute.xlu0 %357 }
  0xa6   : > { %v550_v51 = vmul.f32 %v2389_v2, %v541_v19  ;;  %v367_v49 = vmul.f32 %v2409_v47, %v358_v29  ;;  %v2464_v19 = vmul.f32 %v1763_v60, %v2187_v33  ;;  %v2480_v29 = vmul.f32 %v1767_v39, %v2187_v33 }
  0xa8   : > { %2903 = vst [vmem:[#allocation34_spill] sm:$0xff] %v2464_v19  ;;  %v590_v12 = vmul.f32 %v1653_v42, %v550_v51  ;;  %2907 = vst [vmem:[#allocation38_spill] sm:$0xff] %v2480_v29  ;;  %v552_v50 = vrot.slane %v550_v51, 7  ;;  %v2486_v19 = vmul.f32 %v2452_v44, %v1354_v52  ;;  %v2494_v60 = vmul.f32 %v1651_v7, %v550_v51 }
  0xa9   : > { %v543_v53 = vpop.permute.xlu1 %542  ;;  %v360_v8 = vpop.permute.xlu0 %359  ;;  %v594_v46 = vrot.slane %v550_v51, 1  ;;  %v369_v55 = vrot.slane %v367_v49, 7  ;;  %v397_v29 = vmul.f32 %v1626_v43, %v367_v49  ;;  %v409_v5 = vmul.f32 %v1628_v16, %v367_v49  ;;  %v1649_v51 = vld [vmem:[%s2867_s4 + $0x5] ss:$0 sm:$0xff] }
  0xaa   : > { %2909 = vst [vmem:[#allocation40_spill] sm:$0xff] %v2486_v19  ;;  %v551_v33 = vmul.f32 %v2389_v2, %v543_v53  ;;  %v368_v22 = vmul.f32 %v2409_v47, %v360_v8  ;;  %v413_v48 = vrot.slane %v367_v49, 1  ;;  %v2499_v52 = vadd.f32 %v590_v12, %v2159_v6 }
  0xac   : > { %v553_v44 = vrot.slane %v551_v33, 7  ;;  %v579_v32 = vmul.f32 %v1651_v7, %v551_v33  ;;  %v595_v39 = vrot.slane %v551_v33, 1  ;;  %v591_v58 = vmul.f32 %v1653_v42, %v551_v33  ;;  %v1655_v42 = vld [vmem:[%s2867_s4 + $0xf] ss:$0 sm:$0xff] }
  0xad   : > { %v370_v61 = vrot.slane %v368_v22, 7  ;;  %v398_v59 = vmul.f32 %v1626_v43, %v368_v22  ;;  %v414_v11 = vrot.slane %v368_v22, 1  ;;  %v410_v12 = vmul.f32 %v1628_v16, %v368_v22  ;;  %v651_v37 = vpop.permute.xlu0 %650 }
  0xae   : > { %v554_v8 = vsel %vm373_vm1, %v552_v50, %v553_v44  ;;  %v555_v49 = vsel %vm373_vm1, %v553_v44, %v552_v50  ;;  %v596_v6 = vsel %vm415_vm0, %v594_v46, %v595_v39  ;;  %v597_v43 = vsel %vm415_vm0, %v595_v39, %v594_v46  ;;  %v1624_v44 = vld [vmem:[%s2867_s4] ss:$0 sm:$0xff]  ;;  %v1630_v39 = vld [vmem:[%s2867_s4 + $0xa] ss:$0 sm:$0xff] }
  0xaf   : > { %v556_v7 = vmul.f32 %v555_v49, %v2121_v54  ;;  %v557_v53 = vmul.f32 %v554_v8, %v2137_v62  ;;  %v598_v33 = vmul.f32 %v2089_v38, %v596_v6  ;;  %v599_v19 = vmul.f32 %v2142_v63, %v597_v43  ;;  %v653_v43 = vpop.permute.xlu1 %652 }
  0xb0   : > { %v374_v16 = vsel %vm373_vm1, %v369_v55, %v370_v61  ;;  %v375_v50 = vsel %vm373_vm1, %v370_v61, %v369_v55  ;;  %v416_v22 = vsel %vm415_vm0, %v413_v48, %v414_v11  ;;  %v593_v46 = vadd.f32 %v591_v58, %v2176_v27 }
  0xb1   : > { %v566_v8 = vmul.f32 %v1649_v51, %v556_v7  ;;  %v567_v49 = vmul.f32 %v1649_v51, %v557_v53  ;;  %v376_v6 = vmul.f32 %v375_v50, %v2121_v54  ;;  %v609_v18 = vmul.f32 %v1655_v42, %v599_v19  ;;  %v1669_v53 = vld [vmem:[%s2867_s4 + $0x12] ss:$0 sm:$0xff] }
  0xb2   : > { %v377_v3 = vmul.f32 %v374_v16, %v2137_v62  ;;  %v417_v55 = vsel %vm415_vm0, %v414_v11, %v413_v48  ;;  %v418_v61 = vmul.f32 %v2089_v38, %v416_v22  ;;  %v608_v7 = vmul.f32 %v1655_v42, %v598_v33  ;;  %v1671_v48 = vld [vmem:[%s2867_s4 + $0x18] ss:$0 sm:$0xff] }
  0xb3   : > { %v569_v51 = vadd.f32 %v567_v49, %v2174_v26  ;;  %v385_v27 = vmul.f32 %v1624_v44, %v376_v6  ;;  %v419_v58 = vmul.f32 %v2142_v63, %v417_v55  ;;  %v568_v19 = vadd.f32 %v566_v8, %v2171_v23 }
  0xb4   : > { %v386_v50 = vmul.f32 %v1624_v44, %v377_v3  ;;  %v428_v16 = vmul.f32 %v1630_v39, %v418_v61  ;;  %v655_v11 = vmul.f32 %v2409_v47, %v653_v43  ;;  %v654_v33 = vmul.f32 %v2409_v47, %v651_v37 }
  0xb5   : > { %v581_v22 = vadd.f32 %v579_v32, %v569_v51  ;;  %v399_v26 = vadd.f32 %v397_v29, %v385_v27  ;;  %v429_v42 = vmul.f32 %v1630_v39, %v419_v58  ;;  %v611_v49 = vadd.f32 %v609_v18, %v593_v46  ;;  %v827_v32 = vpop.permute.xlu1 %826  ;;  %v1693_v58 = vld [vmem:[%s2867_s4 + $0x17] ss:$0 sm:$0xff] }
  0xb6   : > { %v400_v6 = vadd.f32 %v398_v59, %v386_v50  ;;  %v657_v55 = vrot.slane %v655_v11, 7  ;;  %v683_v45 = vmul.f32 %v1669_v53, %v655_v11  ;;  %v695_v3 = vmul.f32 %v1671_v48, %v655_v11 }
  0xb7   : > { %v745_v40 = vadd.f32 %v2255_v1, %v581_v22  ;;  %v431_v23 = vadd.f32 %v429_v42, %v410_v12  ;;  %v430_v44 = vadd.f32 %v428_v16, %v409_v5  ;;  %v699_v61 = vrot.slane %v655_v11, 1  ;;  %v1667_v5 = vld [vmem:[%s2867_s4 + $0x10] ss:$0 sm:$0xff]  ;;  %v825_v11 = vpop.permute.xlu0 %824 }
  0xb8   : > { %v449_v8 = vadd.f32 %v2274_v20, %v400_v6  ;;  %v448_v56 = vadd.f32 %v2264_v9, %v399_v26  ;;  %v656_v43 = vrot.slane %v654_v33, 7  ;;  %v682_v18 = vmul.f32 %v1669_v53, %v654_v33  ;;  %v1673_v53 = vld [vmem:[%s2867_s4 + $0x1a] ss:$0 sm:$0xff] }
  0xb9   : > { %v2552_v29 = vadd.f32 %v2245_v57, %v745_v40  ;;  %v497_v37 = vadd.f32 %v2262_v4, %v431_v23  ;;  %v496_v59 = vadd.f32 %v2290_v30, %v430_v44  ;;  %v694_v12 = vmul.f32 %v1671_v48, %v654_v33 }
  0xba   : > { %v473_v1 = vadd.f32 %v2258_v24, %v449_v8  ;;  %v472_v20 = vadd.f32 %v2287_v28, %v448_v56  ;;  %v658_v9 = vsel %vm373_vm1, %v656_v43, %v657_v55  ;;  %v659_v57 = vsel %vm373_vm1, %v657_v55, %v656_v43 }
  0xbb   : > { %v527_v4 = vadd.f32 %v2276_v21, %v497_v37  ;;  %v526_v30 = vadd.f32 %v2293_v15, %v496_v59  ;;  %v660_v40 = vmul.f32 %v659_v57, %v2121_v54  ;;  %v661_v24 = vmul.f32 %v658_v9, %v2137_v62  ;;  %v1695_v21 = vld [vmem:[%s2867_s4 + $0x1d] ss:$0 sm:$0xff]  ;;  %v931_v37 = vpop.permute.xlu1 %930 }
  0xbc   : > { %v698_v46 = vrot.slane %v654_v33, 1  ;;  %v793_v39 = vadd.f32 %v2299_v31, %v611_v49  ;;  %v829_v28 = vmul.f32 %v2389_v2, %v827_v32  ;;  %v580_v15 = vadd.f32 %v2494_v60, %v568_v19 }
  0xbd   : > { %v697_v56 = vadd.f32 %v695_v3, %v527_v4  ;;  %v670_v51 = vmul.f32 %v1667_v5, %v660_v40  ;;  %v671_v27 = vmul.f32 %v1667_v5, %v661_v24  ;;  %v696_v31 = vadd.f32 %v694_v12, %v526_v30  ;;  %v2912_v4 = vld [vmem:[#allocation10_spill] sm:$0xff] }
  0xbe   : > { %v700_v50 = vsel %vm415_vm0, %v698_v46, %v699_v61  ;;  %v701_v16 = vsel %vm415_vm0, %v699_v61, %v698_v46  ;;  %v823_v48 = vadd.f32 %v2301_v10, %v793_v39  ;;  %v831_v19 = vrot.slane %v829_v28, 7  ;;  %v1711_v39 = vld [vmem:[%s2867_s4 + $0x22] ss:$0 sm:$0xff] }
  0xbf   : > { %v672_v22 = vadd.f32 %v670_v51, %v472_v20  ;;  %v673_v26 = vadd.f32 %v671_v27, %v473_v1  ;;  %v702_v42 = vmul.f32 %v2089_v38, %v700_v50  ;;  %v703_v60 = vmul.f32 %v2142_v63, %v701_v16  ;;  %v929_v20 = vpop.permute.xlu0 %928  ;;  %v2913_v27 = vld [vmem:[#allocation8_spill] sm:$0xff]  ;;  %v1105_v50 = vpop.permute.xlu1 %1104 }
  0xc0   : > { %v2588_v33 = vmul.f32 %v1693_v58, %v829_v28  ;;  %v869_v49 = vmul.f32 %v1695_v21, %v829_v28  ;;  %v610_v6 = vadd.f32 %v608_v7, %v2499_v52  ;;  %v873_v8 = vrot.slane %v829_v28, 1 }
  0xc1   : > { %v684_v55 = vadd.f32 %v682_v18, %v672_v22  ;;  %v685_v23 = vadd.f32 %v683_v45, %v673_v26  ;;  %v712_v3 = vmul.f32 %v1673_v53, %v702_v42  ;;  %v713_v44 = vmul.f32 %v1673_v53, %v703_v60  ;;  %v2914_v22 = vld [vmem:[#allocation11_spill] sm:$0xff] }
  0xc2   : > { %v744_v10 = vadd.f32 %v2253_v0, %v580_v15  ;;  %v792_v61 = vadd.f32 %v2307_v35, %v610_v6  ;;  %v828_v43 = vmul.f32 %v2389_v2, %v825_v11  ;;  %v871_v52 = vadd.f32 %v869_v49, %v823_v48 }
  0xc3   : > { %v714_v59 = vadd.f32 %v712_v3, %v696_v31  ;;  %v732_v32 = vadd.f32 %v2278_v14, %v684_v55  ;;  %v2596_v1 = vadd.f32 %v2284_v25, %v685_v23  ;;  %v715_v5 = vadd.f32 %v713_v44, %v697_v56  ;;  %v1691_v14 = vld [vmem:[%s2867_s4 + $0x15] ss:$0 sm:$0xff]  ;;  %v1103_v42 = vpop.permute.xlu0 %1102  ;;  %v1735_v44 = vld [vmem:[%s2867_s4 + $0x27] ss:$0 sm:$0xff] }
  0xc4   : > { %v768_v45 = vadd.f32 %v2304_v34, %v744_v10  ;;  %v822_v7 = vadd.f32 %v2315_v36, %v792_v61  ;;  %v830_v18 = vrot.slane %v828_v43, 7  ;;  %v868_v0 = vmul.f32 %v1695_v21, %v828_v43 }
  0xc5   : > { %v872_v9 = vrot.slane %v828_v43, 1  ;;  %v781_v35 = vadd.f32 %v2330_v17, %v715_v5  ;;  %v933_v57 = vmul.f32 %v2409_v47, %v931_v37  ;;  %v2610_v36 = vadd.f32 %v2343_v41, %v732_v32  ;;  %v1697_v17 = vld [vmem:[%s2867_s4 + $0x1f] ss:$0 sm:$0xff]  ;;  %v1713_v41 = vld [vmem:[%s2867_s4 + $0x28] ss:$0 sm:$0xff] }
  0xc6   : > { %v832_v25 = vsel %vm373_vm1, %v830_v18, %v831_v19  ;;  %v833_v34 = vsel %vm373_vm1, %v831_v19, %v830_v18  ;;  %v780_v30 = vadd.f32 %v2912_v4, %v714_v59  ;;  %v856_v12 = vmul.f32 %v1693_v58, %v828_v43  ;;  %v1709_v18 = vld [vmem:[%s2867_s4 + $0x20] ss:$0 sm:$0xff] }
  0xc7   : > { %v834_v40 = vmul.f32 %v833_v34, %v2121_v54  ;;  %v835_v24 = vmul.f32 %v832_v25, %v2137_v62  ;;  %v874_v46 = vsel %vm415_vm0, %v872_v9, %v873_v8  ;;  %v870_v28 = vadd.f32 %v868_v0, %v822_v7 }
  0xc8   : > { %v875_v56 = vsel %vm415_vm0, %v873_v8, %v872_v9  ;;  %v876_v51 = vmul.f32 %v2089_v38, %v874_v46  ;;  %v811_v21 = vadd.f32 %v2913_v27, %v781_v35  ;;  %v935_v31 = vrot.slane %v933_v57, 7  ;;  %v1737_v9 = vld [vmem:[%s2867_s4 + $0x2d] ss:$0 sm:$0xff]  ;;  %v1207_v46 = vpop.permute.xlu0 %1206 }
  0xc9   : > { %v844_v58 = vmul.f32 %v1691_v14, %v834_v40  ;;  %v845_v15 = vmul.f32 %v1691_v14, %v835_v24  ;;  %v877_v53 = vmul.f32 %v2142_v63, %v875_v56  ;;  %v2631_v48 = vmul.f32 %v1711_v39, %v933_v57  ;;  %v2916_v40 = vld [vmem:[#allocation13_spill] sm:$0xff]  ;;  %v2917_v56 = vld [vmem:[#allocation16_spill] sm:$0xff] }
  0xca   : > { %v886_v16 = vmul.f32 %v1697_v17, %v876_v51  ;;  %v973_v11 = vmul.f32 %v1713_v41, %v933_v57  ;;  %v810_v26 = vadd.f32 %v2914_v22, %v780_v30  ;;  %v977_v49 = vrot.slane %v933_v57, 1 }
  0xcb   : > { %v846_v60 = vadd.f32 %v844_v58, %v768_v45  ;;  %v887_v19 = vmul.f32 %v1697_v17, %v877_v53  ;;  %v932_v6 = vmul.f32 %v2409_v47, %v929_v20  ;;  %v2636_v55 = vadd.f32 %v845_v15, %v2552_v29  ;;  %v2915_v29 = vld [vmem:[#allocation6_spill] sm:$0xff] }
  0xcc   : > { %v888_v23 = vadd.f32 %v886_v16, %v870_v28  ;;  %v2638_v3 = vadd.f32 %v973_v11, %v811_v21  ;;  %v1107_v8 = vmul.f32 %v2389_v2, %v1105_v50  ;;  %v1106_v37 = vmul.f32 %v2389_v2, %v1103_v42  ;;  %v2918_v21 = vld [vmem:[#allocation15_spill] sm:$0xff]  ;;  %v2919_v53 = vld [vmem:[#allocation14_spill] sm:$0xff]  ;;  %v2920_v42 = vld [vmem:[#allocation17_spill] sm:$0xff] }
  0xcd   : > { %v858_v10 = vadd.f32 %v856_v12, %v846_v60  ;;  %v934_v61 = vrot.slane %v932_v6, 7  ;;  %v960_v43 = vmul.f32 %v1711_v39, %v932_v6  ;;  %v972_v59 = vmul.f32 %v1713_v41, %v932_v6  ;;  %v1209_v12 = vpop.permute.xlu1 %1208 }
  0xce   : > { %v976_v32 = vrot.slane %v932_v6, 1  ;;  %v889_v5 = vadd.f32 %v887_v19, %v871_v52  ;;  %v1109_v45 = vrot.slane %v1107_v8, 7  ;;  %v2656_v35 = vmul.f32 %v1735_v44, %v1107_v8  ;;  %v1715_v52 = vld [vmem:[%s2867_s4 + $0x2a] ss:$0 sm:$0xff] }
  0xcf   : > { %v1022_v7 = vadd.f32 %v2915_v29, %v858_v10  ;;  %v936_v20 = vsel %vm373_vm1, %v934_v61, %v935_v31  ;;  %v937_v0 = vsel %vm373_vm1, %v935_v31, %v934_v61  ;;  %v974_v4 = vadd.f32 %v972_v59, %v810_v26  ;;  %v1733_v10 = vld [vmem:[%s2867_s4 + $0x25] ss:$0 sm:$0xff]  ;;  %v2921_v29 = vld [vmem:[#allocation12_spill] sm:$0xff] }
  0xd0   : > { %v938_v57 = vmul.f32 %v937_v0, %v2121_v54  ;;  %v939_v14 = vmul.f32 %v936_v20, %v2137_v62  ;;  %v978_v25 = vsel %vm415_vm0, %v976_v32, %v977_v49  ;;  %v979_v34 = vsel %vm415_vm0, %v977_v49, %v976_v32  ;;  %v1755_v32 = vld [vmem:[%s2867_s4 + $0x38] ss:$0 sm:$0xff] }
  0xd1   : > { %v980_v30 = vmul.f32 %v2089_v38, %v978_v25  ;;  %v981_v17 = vmul.f32 %v2142_v63, %v979_v34  ;;  %v1071_v24 = vadd.f32 %v2916_v40, %v889_v5  ;;  %v1147_v28 = vmul.f32 %v1737_v9, %v1107_v8  ;;  %v1383_v5 = vpop.permute.xlu1 %1382 }
  0xd2   : > { %v948_v39 = vmul.f32 %v1709_v18, %v938_v57  ;;  %v2670_v41 = vmul.f32 %v1709_v18, %v939_v14  ;;  %v1046_v51 = vadd.f32 %v2917_v56, %v1022_v7  ;;  %v1151_v15 = vrot.slane %v1107_v8, 1 }
  0xd3   : > { %v990_v27 = vmul.f32 %v1715_v52, %v980_v30  ;;  %v1101_v58 = vadd.f32 %v2918_v21, %v1071_v24  ;;  %v1070_v31 = vadd.f32 %v2919_v53, %v888_v23  ;;  %v2676_v16 = vmul.f32 %v1715_v52, %v981_v17 }
  0xd4   : > { %v950_v50 = vadd.f32 %v948_v39, %v2610_v36  ;;  %v1108_v11 = vrot.slane %v1106_v37, 7  ;;  %v1134_v22 = vmul.f32 %v1735_v44, %v1106_v37  ;;  %v1146_v19 = vmul.f32 %v1737_v9, %v1106_v37  ;;  %v1753_v44 = vld [vmem:[%s2867_s4 + $0x32] ss:$0 sm:$0xff] }
  0xd5   : > { %v2678_v26 = vadd.f32 %v990_v27, %v974_v4  ;;  %v1100_v60 = vadd.f32 %v2920_v42, %v1070_v31  ;;  %v1150_v49 = vrot.slane %v1106_v37, 1  ;;  %v2692_v8 = vmul.f32 %v2409_v47, %v1209_v12  ;;  %v2922_v12 = vld [vmem:[#allocation22_spill] sm:$0xff]  ;;  %v2923_v31 = vld [vmem:[#allocation19_spill] sm:$0xff] }
  0xd6   : > { %v962_v6 = vadd.f32 %v960_v43, %v950_v50  ;;  %v1110_v23 = vsel %vm373_vm1, %v1108_v11, %v1109_v45  ;;  %v1111_v36 = vsel %vm373_vm1, %v1109_v45, %v1108_v11  ;;  %v2694_v61 = vadd.f32 %v1147_v28, %v1101_v58  ;;  %v1381_v45 = vpop.permute.xlu0 %1380  ;;  %v2924_v42 = vld [vmem:[#allocation7_spill] sm:$0xff] }
  0xd7   : > { %v1112_v43 = vmul.f32 %v1111_v36, %v2121_v54  ;;  %v1113_v37 = vmul.f32 %v1110_v23, %v2137_v62  ;;  %v1152_v59 = vsel %vm415_vm0, %v1150_v49, %v1151_v15  ;;  %v2704_v18 = vadd.f32 %v1146_v19, %v1100_v60 }
  0xd8   : > { %v1010_v7 = vadd.f32 %v2921_v29, %v962_v6  ;;  %v1153_v20 = vsel %vm415_vm0, %v1151_v15, %v1150_v49  ;;  %v2709_v0 = vmul.f32 %v2089_v38, %v1152_v59  ;;  %v1213_v57 = vrot.slane %v2692_v8, 7  ;;  %v1751_v49 = vld [vmem:[%s2867_s4 + $0x30] ss:$0 sm:$0xff] }
  0xd9   : > { %v1122_v9 = vmul.f32 %v1733_v10, %v1112_v43  ;;  %v2712_v52 = vmul.f32 %v2142_v63, %v1153_v20  ;;  %v2716_v14 = vmul.f32 %v1753_v44, %v2692_v8  ;;  %v2719_v25 = vmul.f32 %v1755_v32, %v2692_v8  ;;  %v2926_v43 = vld [vmem:[#allocation18_spill] sm:$0xff]  ;;  %v2928_v20 = vld [vmem:[#allocation24_spill] sm:$0xff] }
  0xda   : > { %v1210_v34 = vmul.f32 %v2409_v47, %v1207_v46  ;;  %v2723_v4 = vmul.f32 %v2389_v2, %v1383_v5  ;;  %v2726_v30 = vmul.f32 %v2389_v2, %v1381_v45  ;;  %v1255_v40 = vrot.slane %v2692_v8, 1  ;;  %v1777_v2 = vld [vmem:[%s2867_s4 + $0x37] ss:$0 sm:$0xff] }
  0xdb   : > { %v1124_v17 = vadd.f32 %v1122_v9, %v1046_v51  ;;  %v859_v24 = vadd.f32 %v2588_v33, %v2636_v55  ;;  %v1034_v39 = vadd.f32 %v2922_v12, %v1010_v7  ;;  %v1123_v21 = vmul.f32 %v1733_v10, %v1113_v37 }
  0xdc   : > { %v1212_v28 = vrot.slane %v1210_v34, 7  ;;  %v1238_v56 = vmul.f32 %v1753_v44, %v1210_v34  ;;  %v1250_v27 = vmul.f32 %v1755_v32, %v1210_v34  ;;  %v1254_v47 = vrot.slane %v1210_v34, 1  ;;  %v2925_v44 = vld [vmem:[#allocation20_spill] sm:$0xff]  ;;  %v2927_v32 = vld [vmem:[#allocation9_spill] sm:$0xff] }
  0xdd   : > { %v1136_v58 = vadd.f32 %v1134_v22, %v1124_v17  ;;  %v1387_v46 = vrot.slane %v2723_v4, 7  ;;  %v1386_v15 = vrot.slane %v2726_v30, 7  ;;  %v1429_v55 = vrot.slane %v2723_v4, 1  ;;  %v1775_v22 = vld [vmem:[%s2867_s4 + $0x35] ss:$0 sm:$0xff] }
  0xde   : > { %v1214_v51 = vsel %vm373_vm1, %v1212_v28, %v1213_v57  ;;  %v1215_v33 = vsel %vm373_vm1, %v1213_v57, %v1212_v28  ;;  %v1428_v53 = vrot.slane %v2726_v30, 1  ;;  %v1023_v60 = vadd.f32 %v2924_v42, %v859_v24  ;;  %v1757_v24 = vld [vmem:[%s2867_s4 + $0x3a] ss:$0 sm:$0xff]  ;;  %v2929_v28 = vld [vmem:[#allocation28_spill] sm:$0xff] }
  0xdf   : > { %v1300_v50 = vadd.f32 %v2923_v31, %v1136_v58  ;;  %v1389_v11 = vsel %vm373_vm1, %v1387_v46, %v1386_v15  ;;  %v1388_v19 = vsel %vm373_vm1, %v1386_v15, %v1387_v46  ;;  %v1412_v10 = vmul.f32 %v1777_v2, %v2726_v30  ;;  %v1739_v15 = vld [vmem:[%s2867_s4 + $0x2f] ss:$0 sm:$0xff]  ;;  %v2930_v31 = vld [vmem:[#allocation21_spill] sm:$0xff] }
  0xe0   : > { %v1390_v6 = vmul.f32 %v1389_v11, %v2121_v54  ;;  %v1391_v23 = vmul.f32 %v1388_v19, %v2137_v62  ;;  %v1216_v36 = vmul.f32 %v1215_v33, %v2121_v54  ;;  %v1047_v37 = vadd.f32 %v2926_v43, %v1023_v60  ;;  %v2931_v11 = vld [vmem:[#allocation23_spill] sm:$0xff]  ;;  %v2938_v43 = vld [vmem:[#allocation38_spill] sm:$0xff] }
  0xe1   : > { %v1324_v8 = vadd.f32 %v2925_v44, %v1300_v50  ;;  %v1413_v59 = vmul.f32 %v1777_v2, %v2723_v4  ;;  %v757_v5 = vadd.f32 %v2927_v32, %v2596_v1  ;;  %v1217_v7 = vmul.f32 %v1214_v51, %v2137_v62  ;;  %v2935_v19 = vld [vmem:[#allocation27_spill] sm:$0xff]  ;;  %v2937_v44 = vld [vmem:[#allocation34_spill] sm:$0xff] }
  0xe2   : > { %v1400_v45 = vmul.f32 %v1775_v22, %v1390_v6  ;;  %v1226_v29 = vmul.f32 %v1751_v49, %v1216_v36  ;;  %v1058_v9 = vadd.f32 %v2928_v20, %v2678_v26  ;;  %v1125_v57 = vadd.f32 %v1123_v21, %v1047_v37  ;;  %v2939_v20 = vld [vmem:[#allocation40_spill] sm:$0xff] }
  0xe3   : > { %v1401_v34 = vmul.f32 %v1775_v22, %v1391_v23  ;;  %v951_v54 = vadd.f32 %v2670_v41, %v757_v5  ;;  %v1256_v17 = vsel %vm415_vm0, %v1254_v47, %v1255_v40  ;;  %v993_v41 = vadd.f32 %v2676_v16, %v2638_v3  ;;  %v2932_v22 = vld [vmem:[#allocation25_spill] sm:$0xff]  ;;  %v2933_v3 = vld [vmem:[#allocation30_spill] sm:$0xff] }
  0xe4   : > { %v1402_v12 = vadd.f32 %v1400_v45, %v1324_v8  ;;  %v1228_v1 = vadd.f32 %v1226_v29, %v1034_v39  ;;  %v1088_v58 = vadd.f32 %v2929_v28, %v1058_v9  ;;  %v1258_v62 = vmul.f32 %v2089_v38, %v1256_v17 }
  0xe5   : > { %v1137_v46 = vadd.f32 %v2656_v35, %v1125_v57  ;;  %v963_v26 = vadd.f32 %v2631_v48, %v951_v54  ;;  %v1257_v21 = vsel %vm415_vm0, %v1255_v40, %v1254_v47  ;;  %v1059_v48 = vadd.f32 %v2932_v22, %v993_v41  ;;  %v2940_v57 = vld [vmem:[#allocation29_spill] sm:$0xff]  ;;  %v2941_v54 = vld [vmem:[#allocation31_spill] sm:$0xff] }
  0xe6   : > { %v1414_v2 = vadd.f32 %v1412_v10, %v1402_v12  ;;  %v1240_v39 = vadd.f32 %v1238_v56, %v1228_v1  ;;  %v1252_v51 = vadd.f32 %v1250_v27, %v1088_v58  ;;  %v1268_v33 = vmul.f32 %v1757_v24, %v1258_v62  ;;  %v2934_v56 = vld [vmem:[#allocation26_spill] sm:$0xff]  ;;  %v2936_v10 = vld [vmem:[#allocation32_spill] sm:$0xff] }
  0xe7   : > { %v1301_v50 = vadd.f32 %v2930_v31, %v1137_v46  ;;  %v1011_v35 = vadd.f32 %v2931_v11, %v963_v26  ;;  %v1259_v42 = vmul.f32 %v2142_v63, %v1257_v21  ;;  %v1227_v40 = vmul.f32 %v1751_v49, %v1217_v7  ;;  %v1779_v49 = vld [vmem:[%s2867_s4 + $0x3d] ss:$0 sm:$0xff]  ;;  %v2943_v58 = vld [vmem:[#allocation36_spill] sm:$0xff]  ;;  %v2948_v11 = vld [vmem:[#allocation42_spill] sm:$0xff] }
  0xe8   : > { %1469 = vrot.lane.b32.xlu0 %v1414_v2, %s1845_s26  ;;  %v1288_v16 = vadd.f32 %v2933_v3, %v1240_v39  ;;  %v1270_v47 = vadd.f32 %v1268_v33, %v1252_v51  ;;  %v1164_v60 = vmul.f32 %v1739_v15, %v2709_v0  ;;  %v1089_v23 = vadd.f32 %v2936_v10, %v1059_v48  ;;  %v2946_v39 = vld [vmem:[#allocation39_spill] sm:$0xff]  ;;  %v2947_v33 = vld [vmem:[#allocation37_spill] sm:$0xff] }
  0xe9   : > { %v1325_v27 = vadd.f32 %v2934_v56, %v1301_v50  ;;  %v1035_v6 = vadd.f32 %v2935_v19, %v1011_v35  ;;  %v1269_v36 = vmul.f32 %v1757_v24, %v1259_v42  ;;  %v1430_v0 = vsel %vm415_vm0, %v1428_v53, %v1429_v55  ;;  %v2942_v24 = vld [vmem:[#allocation33_spill] sm:$0xff] }
  0xea   : > { %v1312_v8 = vadd.f32 %v2937_v44, %v1288_v16  ;;  %v1336_v37 = vadd.f32 %v2938_v43, %v1270_v47  ;;  %v1166_v32 = vadd.f32 %v1164_v60, %v2704_v18  ;;  %v1253_v29 = vadd.f32 %v2719_v25, %v1089_v23  ;;  %v1781_v18 = vld [vmem:[%s2867_s4 + $0x3f] ss:$0 sm:$0xff]  ;;  %v1782_v43 = vld [vmem:[%s2870_s7] ss:$0 sm:$0xff] }
  0xeb   : > { %v1403_v5 = vadd.f32 %v1401_v34, %v1325_v27  ;;  %v1229_v45 = vadd.f32 %v1227_v40, %v1035_v6  ;;  %v1432_v7 = vmul.f32 %v2089_v38, %v1430_v0  ;;  %v1365_v17 = vmul.f32 %v2941_v54, %v2940_v57  ;;  %v1786_v0 = vld [vmem:[%s2870_s7 + $0x2] ss:$0 sm:$0xff]  ;;  %v1788_v57 = vld [vmem:[%s2870_s7 + $0x3] ss:$0 sm:$0xff] }
  0xec   : > { %1446 = vrot.lane.b32.xlu0 %v1312_v8, %s1845_s26  ;;  %v1366_v9 = vadd.f32 %v2939_v20, %v1336_v37  ;;  %v1348_v12 = vadd.f32 %v2942_v24, %v1166_v32  ;;  %v1165_v34 = vmul.f32 %v1739_v15, %v2712_v52  ;;  %v1271_v28 = vadd.f32 %v1269_v36, %v1253_v29  ;;  %v2944_v52 = vld [vmem:[#allocation35_spill] sm:$0xff] }
  0xed   : > { %v1415_v1 = vadd.f32 %v1413_v59, %v1403_v5  ;;  %v1241_v25 = vadd.f32 %v2716_v14, %v1229_v45  ;;  %v1424_v38 = vmul.f32 %v1779_v49, %v2726_v30  ;;  %v1442_v46 = vmul.f32 %v1781_v18, %v1432_v7  ;;  %v2945_v14 = vld [vmem:[#allocation41_spill] sm:$0xff] }
  0xee   : > { %v1378_v62 = vadd.f32 %v2943_v58, %v1348_v12  ;;  %v1167_v26 = vadd.f32 %v1165_v34, %v2694_v61  ;;  %v1431_v41 = vsel %vm415_vm0, %v1429_v55, %v1428_v53  ;;  %v1337_v21 = vadd.f32 %v2945_v14, %v1271_v28 }
  0xef   : > { %1471 = vrot.lane.b32.xlu1 %v1415_v1, %s1845_s26  ;;  %v1289_v59 = vadd.f32 %v2944_v52, %v1241_v25  ;;  %v1433_v30 = vmul.f32 %v2142_v63, %v1431_v41  ;;  %v1425_v55 = vmul.f32 %v1779_v49, %v2723_v4  ;;  %v1784_v49 = vld [vmem:[%s2870_s7 + $0x1] ss:$0 sm:$0xff]  ;;  %v1542_v58 = vstv %s2849_s13 }
  0xf0   : > { %1493 = vrot.lane.b32.xlu0 %v1366_v9, %s1845_s26  ;;  %v1426_v15 = vadd.f32 %v1424_v38, %v1378_v62  ;;  %v1349_v51 = vadd.f32 %v2946_v39, %v1167_v26  ;;  %v1367_v31 = vadd.f32 %v1365_v17, %v1337_v21 }
  0xf1   : > { %v1313_v61 = vadd.f32 %v2947_v33, %v1289_v59  ;;  %v1443_v35 = vmul.f32 %v1781_v18, %v1433_v30 }
  0xf2   : > { %v1444_v50 = vadd.f32 %v1442_v46, %v1426_v15  ;;  %v1379_v13 = vadd.f32 %v2948_v11, %v1349_v51 }
  0xf3   : > { %1448 = vrot.lane.b32.xlu1 %v1313_v61, %s1845_s26 }
  0xf4   : > { %1517 = vrot.lane.b32.xlu0 %v1444_v50, %s1845_s26  ;;  %v1427_v53 = vadd.f32 %v1425_v55, %v1379_v13 }
  0xf6   : > { %v1445_v22 = vadd.f32 %v1443_v35, %v1427_v53 }
  0xf7   : > { %1495 = vrot.lane.b32.xlu1 %v1367_v31, %s1845_s26 }
  0xfb   : > { %1519 = vrot.lane.b32.xlu1 %v1445_v22, %s1845_s26 }
 0x15a   : > { %v1470_v48 = vpop.permute.xlu0 %1469 }
 0x15b   : > { %v1473_v42 = vadd.f32 %v1470_v48, %v1414_v2 }
 0x15d   : > { %1475 = vrot.lane.b32.xlu0 %v1473_v42, %s1846_s10 }
 0x15e   : > { %v1447_v63 = vpop.permute.xlu0 %1446 }
 0x15f   : > { %v1450_v3 = vadd.f32 %v1447_v63, %v1312_v8 }
 0x161   : > { %v1472_v16 = vpop.permute.xlu1 %1471  ;;  %1452 = vrot.lane.b32.xlu0 %v1450_v3, %s1846_s10 }
 0x162   : > { %v1474_v40 = vadd.f32 %v1472_v16, %v1415_v1  ;;  %v1494_v47 = vpop.permute.xlu0 %1493 }
 0x163   : > { %v1497_v4 = vadd.f32 %v1494_v47, %v1366_v9 }
 0x164   : > { %1477 = vrot.lane.b32.xlu1 %v1474_v40, %s1846_s10 }
 0x165   : > { %v1449_v60 = vpop.permute.xlu1 %1448  ;;  %1499 = vrot.lane.b32.xlu0 %v1497_v4, %s1846_s10 }
 0x166   : > { %v1451_v56 = vadd.f32 %v1449_v60, %v1313_v61  ;;  %v1518_v27 = vpop.permute.xlu0 %1517 }
 0x167   : > { %v1521_v19 = vadd.f32 %v1518_v27, %v1444_v50 }
 0x168   : > { %1454 = vrot.lane.b32.xlu1 %v1451_v56, %s1846_s10 }
 0x169   : > { %v1496_v6 = vpop.permute.xlu1 %1495  ;;  %1523 = vrot.lane.b32.xlu0 %v1521_v19, %s1846_s10 }
 0x16a   : > { %v1498_v10 = vadd.f32 %v1496_v6, %v1367_v31 }
 0x16c   : > { %1501 = vrot.lane.b32.xlu1 %v1498_v10, %s1846_s10 }
 0x16d   : > { %v1520_v2 = vpop.permute.xlu1 %1519 }
 0x16e   : > { %v1522_v23 = vadd.f32 %v1520_v2, %v1445_v22 }
 0x170   : > { %1525 = vrot.lane.b32.xlu1 %v1522_v23, %s1846_s10 }
 0x1cf   : > { %v1476_v36 = vpop.permute.xlu0 %1475 }
 0x1d0   : > { %v1479_v37 = vadd.f32 %v1476_v36, %v1473_v42 }
 0x1d2   : > { %v1489_v7 = vmul.f32 %v1784_v49, %v1479_v37 }
 0x1d3   : > { %v1453_v44 = vpop.permute.xlu0 %1452 }
 0x1d4   : > { %v1456_v8 = vadd.f32 %v1453_v44, %v1450_v3 }
 0x1d6   : > { %v1478_v32 = vpop.permute.xlu1 %1477  ;;  %v1465_v45 = vmul.f32 %v1782_v43, %v1456_v8 }
 0x1d7   : > { %v1500_v5 = vpop.permute.xlu0 %1499  ;;  %v1480_v12 = vadd.f32 %v1478_v32, %v1474_v40 }
 0x1d8   : > { %v1503_v29 = vadd.f32 %v1500_v5, %v1497_v4  ;;  %v1491_v17 = vadd.f32 %v1489_v7, %v1465_v45 }
 0x1d9   : > { %v1490_v46 = vmul.f32 %v1784_v49, %v1480_v12 }
 0x1da   : > { %v1455_v18 = vpop.permute.xlu1 %1454  ;;  %v1513_v20 = vmul.f32 %v1786_v0, %v1503_v29 }
 0x1db   : > { %v1457_v9 = vadd.f32 %v1455_v18, %v1451_v56  ;;  %v1524_v54 = vpop.permute.xlu0 %1523 }
 0x1dc   : > { %v1527_v24 = vadd.f32 %v1524_v54, %v1521_v19  ;;  %v1515_v34 = vadd.f32 %v1513_v20, %v1491_v17 }
 0x1dd   : > { %v1466_v28 = vmul.f32 %v1782_v43, %v1457_v9 }
 0x1de   : > { %v1502_v1 = vpop.permute.xlu1 %1501  ;;  %v1537_v25 = vmul.f32 %v1788_v57, %v1527_v24 }
 0x1df   : > { %v1504_v38 = vadd.f32 %v1502_v1, %v1498_v10  ;;  %v1492_v59 = vadd.f32 %v1490_v46, %v1466_v28 }
 0x1e0   : > { %v1539_v62 = vadd.f32 %v1537_v25, %v1515_v34 }
 0x1e1   : > { %v1514_v26 = vmul.f32 %v1786_v0, %v1504_v38 }
 0x1e2   : > { %v1543_v41 = vadd.f32 %v1542_v58, %v1539_v62  ;;  %v1526_v52 = vpop.permute.xlu1 %1525 }
 0x1e3   : > { %v1528_v14 = vadd.f32 %v1526_v52, %v1522_v23  ;;  %v1516_v15 = vadd.f32 %v1514_v26, %v1492_v59 }
 0x1e4   : > { %v1545_v21 = vmax.f32 %v1543_v41, 0.0 }
 0x1e5   : > { %v1538_v39 = vmul.f32 %v1788_v57, %v1528_v14 }
 0x1e6   : > { %1547 = vst [vmem:[%s300_s15] sm:$0xff] %v1545_v21 }
 0x1e7   : > { %v1540_v51 = vadd.f32 %v1538_v39, %v1516_v15 }
 0x1e9   : > { %v1544_v33 = vadd.f32 %v1542_v58, %v1540_v51 }
 0x1eb   : > { %v1546_v61 = vmax.f32 %v1544_v33, 0.0 }
 0x1ed   : > { %1548 = vst [vmem:[%s300_s15 + $0x8] sm:$0xff] %v1546_v61 }
 0x1ee PF: > { %s20_s29 = sadd.s32 1, %s1840_s29  }
 0x1ef   : > { %p17_p1 = scmp.ge.s32.totalorder %s20_s29, 4  }
 0x1f1   :  { %19 = sbr.rel (!%p17_p1) target bundleno = 3 (0x3), region = 170 }
 0x1f8   :  { %1570 = vsyncpa [#allocation4], 1 }
 0x1f9   :  { %1572 = vsyncpa [#allocation4 + $0x1], 1 }

</bundles_post_ra>
